<compile_context>
chip_gen: v7x
topology: tpu7x:2x2x1
jax: 0.10.0
libtpu: 0.0.40
codegen_flags: <defaults>
</compile_context>

<pallas_src>
import jax
import jax.numpy as jnp
import numpy as np
from jax import lax
from jax.experimental import pallas as pl
from jax.experimental.pallas import tpu as pltpu

EPS = 1e-5     # nn.BatchNorm2d default
LANE = 128     # TPU lane width; channel axes are padded to a multiple of this


def _rup(x, m):
    return (x + m - 1) // m * m


def _cparams(sem):
    return pltpu.CompilerParams(dimension_semantics=sem,
                                vmem_limit_bytes=32 * 1024 * 1024)


# ----------------------------- Pallas kernels -------------------------------

def _conv1x1_stats(x, w, tm, gm):
    """y = x @ w (1x1 conv, bias dropped: it cancels under batch-norm) plus
    per-tile channel sum / sum-of-squares partials for the global BN reduce."""
    mp, cin = x.shape
    cout = w.shape[1]

    def kernel(x_ref, w_ref, y_ref, st_ref):
        y = jnp.dot(x_ref[...], w_ref[...], preferred_element_type=jnp.float32)
        y_ref[...] = y
        s = jnp.sum(y, axis=0, keepdims=True)
        q = jnp.sum(y * y, axis=0, keepdims=True)
        st_ref[...] = jnp.concatenate([s, q], axis=0)[None]

    return pl.pallas_call(
        kernel,
        grid=(gm,),
        in_specs=[pl.BlockSpec((tm, cin), lambda i: (i, 0)),
                  pl.BlockSpec((cin, cout), lambda i: (0, 0))],
        out_specs=(pl.BlockSpec((tm, cout), lambda i: (i, 0)),
                   pl.BlockSpec((1, 2, cout), lambda i: (i, 0, 0))),
        out_shape=(jax.ShapeDtypeStruct((mp, cout), jnp.float32),
                   jax.ShapeDtypeStruct((gm, 2, cout), jnp.float32)),
        compiler_params=_cparams(("parallel",)),
        cost_estimate=pl.CostEstimate(
            flops=2 * mp * cin * cout, transcendentals=0,
            bytes_accessed=int(x.size * x.dtype.itemsize
                               + w.size * w.dtype.itemsize + mp * cout * 4)),
    )(x, w)


def _conv3x3_stats(y1p, w2, a, c, th, cdt):
    """Fused bn1+relu (folded scale/shift) -> 3x3 conv (pad 1, stride 1) done as
    9 accumulated in-kernel matmuls over a halo'd VMEM tile, plus BN2 partial
    stats.  The pre-BN conv1 output `y1p` (spatially zero-padded by 1) is
    fetched one whole padded image per grid step via a BlockSpec, so the DMA is
    auto-pipelined and re-used across the h tiles of the same image."""
    n, hp, wp, c1p = y1p.shape
    ho, wo = hp - 2, wp - 2
    gh = ho // th
    c2p = w2.shape[2]

    def kernel(y_ref, w_ref, a_ref, c_ref, y2_ref, st_ref, zbuf):
        hb = pl.program_id(1)
        r0 = hb * th
        # Halo'd slab of padded rows [r0, r0 + th + 2) of the current image.
        slab = y_ref[0, pl.ds(r0, th + 2)]                 # (th+2, wp, c1p) f32
        av = a_ref[...].reshape(1, 1, c1p)
        cv = c_ref[...].reshape(1, 1, c1p)
        z = jnp.maximum(slab * av + cv, 0.0)               # bn1 + relu, fused
        # The spatial padding ring holds zeros in y1p, which would map to
        # relu(c1) != 0 after the affine -- mask it back to zero (spatial-only
        # iota, broadcast over channels).
        hh = r0 + lax.broadcasted_iota(jnp.int32, (th + 2, wp, 1), 0)
        ww = lax.broadcasted_iota(jnp.int32, (th + 2, wp, 1), 1)
        interior = (hh >= 1) & (hh <= ho) & (ww >= 1) & (ww <= wo)
        zbuf[...] = jnp.where(interior, z, 0.0).astype(zbuf.dtype)
        # 3x3 conv: 9 accumulated MXU matmuls over shifted VMEM windows
        # (no HBM im2col).  Tap order (dy, dx) matches the weight reshape
        # (kh, kw, cin, cout) done in the wrapper.
        acc = jnp.zeros((th * wo, c2p), jnp.float32)
        for t in range(9):
            dy, dx = divmod(t, 3)
            patch = zbuf[dy:dy + th, dx:dx + wo, :].reshape(th * wo, c1p)
            acc = acc + jnp.dot(patch, w_ref[t],
                                preferred_element_type=jnp.float32)
        y2_ref[...] = acc.reshape(1, th, wo, c2p)
        s = jnp.sum(acc, axis=0, keepdims=True)
        q = jnp.sum(acc * acc, axis=0, keepdims=True)
        st_ref[...] = jnp.concatenate([s, q], axis=0).reshape(1, 1, 2, c2p)

    return pl.pallas_call(
        kernel,
        grid=(n, gh),
        in_specs=[pl.BlockSpec((1, hp, wp, c1p), lambda b, h: (b, 0, 0, 0)),
                  pl.BlockSpec((9, c1p, c2p), lambda b, h: (0, 0, 0)),
                  pl.BlockSpec((1, c1p), lambda b, h: (0, 0)),
                  pl.BlockSpec((1, c1p), lambda b, h: (0, 0))],
        out_specs=(pl.BlockSpec((1, th, wo, c2p), lambda b, h: (b, h, 0, 0)),
                   pl.BlockSpec((1, 1, 2, c2p), lambda b, h: (b, h, 0, 0))),
        out_shape=(jax.ShapeDtypeStruct((n, ho, wo, c2p), jnp.float32),
                   jax.ShapeDtypeStruct((n, gh, 2, c2p), jnp.float32)),
        scratch_shapes=[pltpu.VMEM((th + 2, wp, c1p), cdt)],
        compiler_params=_cparams(("parallel", "parallel")),
        cost_estimate=pl.CostEstimate(
            flops=2 * n * ho * wo * 9 * c1p * c2p, transcendentals=0,
            bytes_accessed=int(y1p.size * 4 + n * ho * wo * c2p * 4)),
    )(y1p, w2, a, c)


def _norm_conv1x1_stats(y_in, w, a, c, tm, gm, m_true, cdt):
    """Fused bn2+relu (folded scale/shift) -> 1x1 conv3, plus BN3 partial stats.
    Padded rows (if M was rounded up to the tile size) are masked to zero so
    they never pollute the global batch statistics."""
    mp, cin = y_in.shape
    cout = w.shape[1]
    mask_rows = mp != m_true

    def kernel(y_ref, w_ref, a_ref, c_ref, o_ref, st_ref):
        z = jnp.maximum(y_ref[...] * a_ref[...] + c_ref[...], 0.0)
        if mask_rows:
            row = (pl.program_id(0) * tm
                   + lax.broadcasted_iota(jnp.int32, (tm, 1), 0))
            z = jnp.where(row < m_true, z, 0.0)
        y = jnp.dot(z.astype(cdt), w_ref[...],
                    preferred_element_type=jnp.float32)
        o_ref[...] = y
        s = jnp.sum(y, axis=0, keepdims=True)
        q = jnp.sum(y * y, axis=0, keepdims=True)
        st_ref[...] = jnp.concatenate([s, q], axis=0)[None]

    return pl.pallas_call(
        kernel,
        grid=(gm,),
        in_specs=[pl.BlockSpec((tm, cin), lambda i: (i, 0)),
                  pl.BlockSpec((cin, cout), lambda i: (0, 0)),
                  pl.BlockSpec((1, cin), lambda i: (0, 0)),
                  pl.BlockSpec((1, cin), lambda i: (0, 0))],
        out_specs=(pl.BlockSpec((tm, cout), lambda i: (i, 0)),
                   pl.BlockSpec((1, 2, cout), lambda i: (i, 0, 0))),
        out_shape=(jax.ShapeDtypeStruct((mp, cout), jnp.float32),
                   jax.ShapeDtypeStruct((gm, 2, cout), jnp.float32)),
        compiler_params=_cparams(("parallel",)),
        cost_estimate=pl.CostEstimate(
            flops=2 * mp * cin * cout, transcendentals=0,
            bytes_accessed=int(mp * cin * 4 + w.size * w.dtype.itemsize
                               + mp * cout * 4)),
    )(y_in, w, a, c)


def _bn_shortcut_relu(y3, a, c, xs, wsc, tm, gm):
    """out = relu(bn3(y3) + shortcut(x)); bn3 is a folded scale/shift (the
    shortcut bias is already folded into c)."""
    mp, cout = y3.shape
    cin = xs.shape[1]

    def kernel(y_ref, a_ref, c_ref, x_ref, w_ref, o_ref):
        sc = jnp.dot(x_ref[...], w_ref[...], preferred_element_type=jnp.float32)
        o_ref[...] = jnp.maximum(y_ref[...] * a_ref[...] + c_ref[...] + sc, 0.0)

    return pl.pallas_call(
        kernel,
        grid=(gm,),
        in_specs=[pl.BlockSpec((tm, cout), lambda i: (i, 0)),
                  pl.BlockSpec((1, cout), lambda i: (0, 0)),
                  pl.BlockSpec((1, cout), lambda i: (0, 0)),
                  pl.BlockSpec((tm, cin), lambda i: (i, 0)),
                  pl.BlockSpec((cin, cout), lambda i: (0, 0))],
        out_specs=pl.BlockSpec((tm, cout), lambda i: (i, 0)),
        out_shape=jax.ShapeDtypeStruct((mp, cout), jnp.float32),
        compiler_params=_cparams(("parallel",)),
        cost_estimate=pl.CostEstimate(
            flops=2 * mp * cin * cout, transcendentals=0,
            bytes_accessed=int(mp * cout * 8 + xs.size * xs.dtype.itemsize)),
    )(y3, a, c, xs, wsc)


# ---------------------- BN fold (tiny glue, per channel) --------------------

def _fold_bn(stats, count, gamma_p, beta_p):
    # stats: (..., 2, Cp) per-tile partials.  The global reduce is a few KB ->
    # done in glue so the grid axes can stay "parallel".
    # var = E[y^2] - mean^2 in f32; fine at these sizes.
    tot = jnp.sum(stats.reshape(-1, 2, stats.shape[-1]), axis=0)
    mean = tot[0] / count
    var = jnp.maximum(tot[1] / count - mean * mean, 0.0)
    a = gamma_p * lax.rsqrt(var + EPS)
    c = beta_p - mean * a
    return a.reshape(1, -1), c.reshape(1, -1)


# ------------------------------- parameters ---------------------------------

def init_params(key, in_channel, kl_size, filters):
    f1, f2, f3 = filters
    keys = jax.random.split(key, 8)

    def conv_init(kw_, kb_, cout, cin, kh, kw):
        fan_in = cin * kh * kw
        bound = 1.0 / np.sqrt(fan_in)
        w = jax.random.uniform(kw_, (cout, cin, kh, kw), jnp.float32,
                               -bound, bound)
        b = jax.random.uniform(kb_, (cout,), jnp.float32, -bound, bound)
        return w, b

    w1, b1 = conv_init(keys[0], keys[1], f1, in_channel, 1, 1)
    w2, b2 = conv_init(keys[2], keys[3], f2, f1, kl_size, kl_size)
    w3, b3 = conv_init(keys[4], keys[5], f3, f2, 1, 1)
    wsc, bsc = conv_init(keys[6], keys[7], f3, in_channel, 1, 1)
    return dict(
        w1=w1, b1=b1, g1=jnp.ones(f1, jnp.float32), beta1=jnp.zeros(f1, jnp.float32),
        w2=w2, b2=b2, g2=jnp.ones(f2, jnp.float32), beta2=jnp.zeros(f2, jnp.float32),
        w3=w3, b3=b3, g3=jnp.ones(f3, jnp.float32), beta3=jnp.zeros(f3, jnp.float32),
        wsc=wsc, bsc=bsc)


# --------------------------------- forward ----------------------------------

def conv_block_forward(params, x_nchw, stride=2, kl_size=3,
                       compute_dtype=jnp.bfloat16):
    # The module hardcodes padding=1 for cov2, i.e. kl_size=3 preserves shape.
    assert kl_size == 3
    cdt = compute_dtype
    f1 = params["w1"].shape[0]
    f2 = params["w2"].shape[0]
    f3 = params["w3"].shape[0]

    x = jnp.transpose(x_nchw, (0, 2, 3, 1)).astype(jnp.float32)   # NCHW->NHWC
    N, H, W, Cin = x.shape
    xs = x[:, ::stride, ::stride, :]     # 1x1 conv w/ stride == subsample
    Ho, Wo = xs.shape[1], xs.shape[2]
    M = N * Ho * Wo

    cin_p = _rup(Cin, LANE)
    c1p = _rup(f1, LANE)
    c2p = _rup(f2, LANE)
    c3p = _rup(f3, LANE)

    # Row tiling of the flattened (N*Ho*Wo, C) slabs.
    tm = 512 if M >= 512 else _rup(M, 16)
    gm = pl.cdiv(M, tm)
    mp = gm * tm

    # Lane-dense, compute-dtype input rows (reused by K1 and the K4 shortcut).
    xs_p = jnp.pad(xs.reshape(M, Cin),
                   ((0, mp - M), (0, cin_p - Cin))).astype(cdt)

    def pad_mat(w2d, rows, cols):
        return jnp.pad(w2d, ((0, rows - w2d.shape[0]),
                             (0, cols - w2d.shape[1]))).astype(cdt)

    def pad_vec(v, cols):
        return jnp.pad(v.astype(jnp.float32), (0, cols - v.shape[0]))

    w1p = pad_mat(params["w1"][:, :, 0, 0].T, cin_p, c1p)
    w3p = pad_mat(params["w3"][:, :, 0, 0].T, c2p, c3p)
    wscp = pad_mat(params["wsc"][:, :, 0, 0].T, cin_p, c3p)
    # 3x3 taps ordered (kh, kw, cin, cout) -> matches zbuf[dy:dy+th, dx:dx+wo]
    # windows inside the K2 kernel.
    w2t = jnp.transpose(params["w2"], (2, 3, 1, 0)).reshape(9, f1, f2)
    w2p = jnp.pad(w2t, ((0, 0), (0, c1p - f1), (0, c2p - f2))).astype(cdt)

    g1p, beta1p = pad_vec(params["g1"], c1p), pad_vec(params["beta1"], c1p)
    g2p, beta2p = pad_vec(params["g2"], c2p), pad_vec(params["beta2"], c2p)
    g3p, beta3p = pad_vec(params["g3"], c3p), pad_vec(params["beta3"], c3p)
    bscp = pad_vec(params["bsc"], c3p)
    # Conv biases b1/b2/b3 are intentionally dropped: a per-channel constant
    # added before a training-mode BatchNorm cancels exactly in (y - mean)/std.

    # ---- K1: cov1 (1x1, stride) + BN1 partial stats -------------------------
    y1, st1 = _conv1x1_stats(xs_p, w1p, tm, gm)
    a1, c1 = _fold_bn(st1, M, g1p, beta1p)

    # ---- K2: fused bn1+relu -> cov2 (3x3, pad 1) + BN2 partial stats --------
    y1_img = y1[:M].reshape(N, Ho, Wo, c1p)
    y1pad = jnp.pad(y1_img, ((0, 0), (1, 1), (1, 1), (0, 0)))   # 1-px zero ring
    th = Ho if Ho <= 16 else next(d for d in (16, 8, 4, 2, 1) if Ho % d == 0)
    y2, st2 = _conv3x3_stats(y1pad, w2p, a1, c1, th, cdt)
    a2, c2 = _fold_bn(st2, M, g2p, beta2p)

    # ---- K3: fused bn2+relu -> cov3 (1x1) + BN3 partial stats ---------------
    y2_p = jnp.pad(y2.reshape(M, c2p), ((0, mp - M), (0, 0)))
    y3, st3 = _norm_conv1x1_stats(y2_p, w3p, a2, c2, tm, gm, M, cdt)
    a3, c3 = _fold_bn(st3, M, g3p, beta3p)
    c3 = c3 + bscp.reshape(1, -1)        # shortcut conv bias folded into shift

    # ---- K4: bn3 + shortcut (1x1, stride) + add + relu ----------------------
    out = _bn_shortcut_relu(y3, a3, c3, xs_p, wscp, tm, gm)
    out = out[:M, :f3].reshape(N, Ho, Wo, f3)
    return jnp.transpose(out, (0, 3, 1, 2))                      # back to NCHW


# ---------------------------- pure-JAX reference -----------------------------

def conv_block_reference(params, x, stride):
    def conv(v, w, b, s, p):
        y = lax.conv_general_dilated(
            v, w, (s, s), [(p, p), (p, p)],
            dimension_numbers=("NCHW", "OIHW", "NCHW"))
        return y + b.reshape(1, -1, 1, 1)

    def bn(v, g, bt):
        mean = jnp.mean(v, axis=(0, 2, 3), keepdims=True)
        var = jnp.mean((v - mean) ** 2, axis=(0, 2, 3), keepdims=True)
        return ((v - mean) * lax.rsqrt(var + EPS)
                * g.reshape(1, -1, 1, 1) + bt.reshape(1, -1, 1, 1))

    relu = lambda v: jnp.maximum(v, 0.0)
    idn = relu(bn(conv(x, params["w1"], params["b1"], stride, 0),
                  params["g1"], params["beta1"]))
    idn = relu(bn(conv(idn, params["w2"], params["b2"], 1, 1),
                  params["g2"], params["beta2"]))
    idn = bn(conv(idn, params["w3"], params["b3"], 1, 0),
             params["g3"], params["beta3"])
    sc = conv(x, params["wsc"], params["bsc"], stride, 0)
    return relu(idn + sc)


# ----------------------------------- main ------------------------------------

if __name__ == "__main__":
    key = jax.random.PRNGKey(0)
    in_channel, kl_size, filters, stride = 4, 3, (8, 8, 16), 2

    k_params, k_x = jax.random.split(key)
    params = init_params(k_params, in_channel, kl_size, filters)
    x = jax.random.normal(k_x, (2, in_channel, 16, 16), jnp.float32)  # NCHW

    fwd = jax.jit(conv_block_forward,
                  static_argnames=("stride", "kl_size", "compute_dtype"))
    ref = np.asarray(conv_block_reference(params, x, stride))

    # f32 MXU path: tight check against the pure-JAX f32 reference.
    out_f32 = jax.block_until_ready(
        fwd(params, x, stride=stride, kl_size=kl_size,
            compute_dtype=jnp.float32))
    np.testing.assert_allclose(np.asarray(out_f32), ref, atol=2e-3, rtol=2e-3)

    # bf16 MXU path: same kernels with bf16 dot inputs and f32 accumulation;
    # looser tolerance for bf16 rounding compounded through three matmul +
    # batch-norm stages.
    out_bf16 = jax.block_until_ready(
        fwd(params, x, stride=stride, kl_size=kl_size,
            compute_dtype=jnp.bfloat16))
    diff = np.abs(np.asarray(out_bf16) - ref)
    assert float(diff.max()) < 2e-1, ("bf16 max abs err", float(diff.max()))
    assert float(diff.mean()) < 3e-2, ("bf16 mean abs err", float(diff.mean()))

    print("KERNEL_OK")
</pallas_src>

<mosaic_0001>
module attributes {stable_mosaic.version = 11 : i64} {
  func.func @kernel(%arg0: i32, %arg1: memref<128x128xf32, #tpu.memory_space<vmem>>, %arg2: memref<128x128xf32, #tpu.memory_space<vmem>>, %arg3: memref<128x128xf32, #tpu.memory_space<vmem>>, %arg4: memref<1x2x128xf32, #tpu.memory_space<vmem>>) attributes {dimension_semantics = [#tpu.dimension_semantics<parallel>], iteration_bounds = array<i64: 1>, scalar_prefetch = 0 : i64, scratch_operands = 0 : i64, tpu.core_type = #tpu.core_type<tc>, window_params = [{transform_indices = @transform_0, window_bounds = array<i64: 128, 128>}, {pipeline_mode = #tpu.pipeline_mode<synchronous>, transform_indices = @transform_1, window_bounds = array<i64: 128, 128>}, {transform_indices = @transform_2, window_bounds = array<i64: 128, 128>}, {transform_indices = @transform_3, window_bounds = array<i64: 1, 2, 128>}]} {
    %c0 = arith.constant 0 : index
    %c0_0 = arith.constant 0 : index
    %0 = vector.load %arg1[%c0, %c0_0] : memref<128x128xf32, #tpu.memory_space<vmem>>, vector<128x128xf32>
    %c0_1 = arith.constant 0 : index
    %c0_2 = arith.constant 0 : index
    %1 = vector.load %arg2[%c0_1, %c0_2] : memref<128x128xf32, #tpu.memory_space<vmem>>, vector<128x128xf32>
    %cst = arith.constant dense<0.000000e+00> : vector<128x128xf32>
    %2 = tpu.matmul %0, %1, %cst {dimension_numbers = #tpu.dot_dimension_numbers<[1], [0], [0], [1], [0, 0, 1, 1], [], []>} : vector<128x128xf32>, vector<128x128xf32>, vector<128x128xf32> -> vector<128x128xf32>
    %c0_3 = arith.constant 0 : index
    %c0_4 = arith.constant 0 : index
    %3 = vector.load %arg3[%c0_3, %c0_4] : memref<128x128xf32, #tpu.memory_space<vmem>>, vector<128x128xf32>
    tpu.vector_store %arg3[%c0_3, %c0_4], %2 {strides = array<i32>} : memref<128x128xf32, #tpu.memory_space<vmem>>, vector<128x128xf32>,
    %cst_5 = arith.constant dense<0.000000e+00> : vector<128xf32>
    %4 = vector.multi_reduction <add>, %2, %cst_5 [0] : vector<128x128xf32> to vector<128xf32>
    %5 = vector.shape_cast %4 : vector<128xf32> to vector<1x128xf32>
    %6 = arith.mulf %2, %2 : vector<128x128xf32>
    %cst_6 = arith.constant dense<0.000000e+00> : vector<128xf32>
    %7 = vector.multi_reduction <add>, %6, %cst_6 [0] : vector<128x128xf32> to vector<128xf32>
    %8 = vector.shape_cast %7 : vector<128xf32> to vector<1x128xf32>
    %9 = tpu.concatenate %5, %8 in 0 : vector<1x128xf32>, vector<1x128xf32> -> vector<2x128xf32>
    %10 = vector.shape_cast %9 : vector<2x128xf32> to vector<1x2x128xf32>
    %c0_7 = arith.constant 0 : index
    %c0_8 = arith.constant 0 : index
    %c0_9 = arith.constant 0 : index
    %11 = vector.load %arg4[%c0_7, %c0_8, %c0_9] : memref<1x2x128xf32, #tpu.memory_space<vmem>>, vector<1x2x128xf32>
    tpu.vector_store %arg4[%c0_7, %c0_8, %c0_9], %10 {strides = array<i32>} : memref<1x2x128xf32, #tpu.memory_space<vmem>>, vector<1x2x128xf32>,
    return
  }
  func.func @transform_0(%arg0: i32) -> (i32, i32) {
    %c0_i32 = arith.constant 0 : i32
    %c0_i32_0 = arith.constant 0 : i32
    return %arg0, %c0_i32 : i32, i32
  }
  func.func @transform_1(%arg0: i32) -> (i32, i32) {
    %c0_i32 = arith.constant 0 : i32
    %c0_i32_0 = arith.constant 0 : i32
    %c0_i32_1 = arith.constant 0 : i32
    return %c0_i32, %c0_i32_0 : i32, i32
  }
  func.func @transform_2(%arg0: i32) -> (i32, i32) {
    %c0_i32 = arith.constant 0 : i32
    %c0_i32_0 = arith.constant 0 : i32
    return %arg0, %c0_i32 : i32, i32
  }
  func.func @transform_3(%arg0: i32) -> (i32, i32, i32) {
    %c0_i32 = arith.constant 0 : i32
    %c0_i32_0 = arith.constant 0 : i32
    %c0_i32_1 = arith.constant 0 : i32
    return %arg0, %c0_i32, %c0_i32_0 : i32, i32, i32
  }
}

module attributes {stable_mosaic.version = 11 : i64} {
  func.func @kernel(%arg0: i32, %arg1: i32, %arg2: memref<1x10x10x128xf32, #tpu.memory_space<vmem>>, %arg3: memref<9x128x128xf32, #tpu.memory_space<vmem>>, %arg4: memref<1x128xf32, #tpu.memory_space<vmem>>, %arg5: memref<1x128xf32, #tpu.memory_space<vmem>>, %arg6: memref<1x8x8x128xf32, #tpu.memory_space<vmem>>, %arg7: memref<1x1x2x128xf32, #tpu.memory_space<vmem>>, %arg8: memref<10x10x128xf32, #tpu.memory_space<vmem>>) attributes {dimension_semantics = [#tpu.dimension_semantics<parallel>, #tpu.dimension_semantics<parallel>], iteration_bounds = array<i64: 2, 1>, scalar_prefetch = 0 : i64, scratch_operands = 1 : i64, tpu.core_type = #tpu.core_type<tc>, window_params = [{transform_indices = @transform_0, window_bounds = array<i64: 1, 10, 10, 128>}, {pipeline_mode = #tpu.pipeline_mode<synchronous>, transform_indices = @transform_1, window_bounds = array<i64: 9, 128, 128>}, {pipeline_mode = #tpu.pipeline_mode<synchronous>, transform_indices = @transform_2, window_bounds = array<i64: 1, 128>}, {pipeline_mode = #tpu.pipeline_mode<synchronous>, transform_indices = @transform_3, window_bounds = array<i64: 1, 128>}, {transform_indices = @transform_4, window_bounds = array<i64: 1, 8, 8, 128>}, {transform_indices = @transform_5, window_bounds = array<i64: 1, 1, 2, 128>}]} {
    %c8_i32 = arith.constant 8 : i32
    %0 = arith.muli %arg1, %c8_i32 : i32
    %c0 = arith.constant 0 : index
    %1 = arith.index_cast %0 : i32 to index
    %c0_0 = arith.constant 0 : index
    %c0_1 = arith.constant 0 : index
    %2 = vector.load %arg2[%c0, %1, %c0_0, %c0_1] : memref<1x10x10x128xf32, #tpu.memory_space<vmem>>, vector<1x10x10x128xf32>
    %3 = vector.shape_cast %2 : vector<1x10x10x128xf32> to vector<10x10x128xf32>
    %c0_2 = arith.constant 0 : index
    %c0_3 = arith.constant 0 : index
    %4 = vector.load %arg4[%c0_2, %c0_3] : memref<1x128xf32, #tpu.memory_space<vmem>>, vector<1x128xf32>
    %5 = vector.shape_cast %4 : vector<1x128xf32> to vector<1x1x128xf32>
    %c0_4 = arith.constant 0 : index
    %c0_5 = arith.constant 0 : index
    %6 = vector.load %arg5[%c0_4, %c0_5] : memref<1x128xf32, #tpu.memory_space<vmem>>, vector<1x128xf32>
    %7 = vector.shape_cast %6 : vector<1x128xf32> to vector<1x1x128xf32>
    %8 = vector.broadcast %5 : vector<1x1x128xf32> to vector<10x10x128xf32>
    %9 = arith.mulf %3, %8 : vector<10x10x128xf32>
    %10 = vector.broadcast %7 : vector<1x1x128xf32> to vector<10x10x128xf32>
    %11 = arith.addf %9, %10 : vector<10x10x128xf32>
    %cst = arith.constant 0.000000e+00 : f32
    %12 = vector.broadcast %cst : f32 to vector<10x10x128xf32>
    %13 = arith.maximumf %11, %12 : vector<10x10x128xf32>
    %14 = tpu.iota {dimensions = array<i32: 0>} : vector<10x10x1xi32>
    %15 = vector.broadcast %0 : i32 to vector<10x10x1xi32>
    %16 = arith.addi %15, %14 : vector<10x10x1xi32>
    %17 = tpu.iota {dimensions = array<i32: 1>} : vector<10x10x1xi32>
    %c1_i32 = arith.constant 1 : i32
    %18 = vector.broadcast %c1_i32 : i32 to vector<10x10x1xi32>
    %19 = arith.cmpi sge, %16, %18 : vector<10x10x1xi32>
    %c8_i32_6 = arith.constant 8 : i32
    %20 = vector.broadcast %c8_i32_6 : i32 to vector<10x10x1xi32>
    %21 = arith.cmpi sle, %16, %20 : vector<10x10x1xi32>
    %22 = arith.andi %19, %21 : vector<10x10x1xi1>
    %c1_i32_7 = arith.constant 1 : i32
    %23 = vector.broadcast %c1_i32_7 : i32 to vector<10x10x1xi32>
    %24 = arith.cmpi sge, %17, %23 : vector<10x10x1xi32>
    %25 = arith.andi %22, %24 : vector<10x10x1xi1>
    %c8_i32_8 = arith.constant 8 : i32
    %26 = vector.broadcast %c8_i32_8 : i32 to vector<10x10x1xi32>
    %27 = arith.cmpi sle, %17, %26 : vector<10x10x1xi32>
    %28 = arith.andi %25, %27 : vector<10x10x1xi1>
    %cst_9 = arith.constant 0.000000e+00 : f32
    %29 = vector.shape_cast %28 : vector<10x10x1xi1> to vector<10x10x1xi1>
    %30 = vector.broadcast %29 : vector<10x10x1xi1> to vector<10x10x128xi1>
    %31 = vector.broadcast %cst_9 : f32 to vector<10x10x128xf32>
    %32 = arith.select %30, %13, %31 : vector<10x10x128xi1>, vector<10x10x128xf32>
    %c0_10 = arith.constant 0 : index
    %c0_11 = arith.constant 0 : index
    %c0_12 = arith.constant 0 : index
    %33 = vector.load %arg8[%c0_10, %c0_11, %c0_12] : memref<10x10x128xf32, #tpu.memory_space<vmem>>, vector<10x10x128xf32>
    tpu.vector_store %arg8[%c0_10, %c0_11, %c0_12], %32 {strides = array<i32>} : memref<10x10x128xf32, #tpu.memory_space<vmem>>, vector<10x10x128xf32>,
    %cst_13 = arith.constant 0.000000e+00 : f32
    %34 = vector.broadcast %cst_13 : f32 to vector<64x128xf32>
    %c0_14 = arith.constant 0 : index
    %c0_15 = arith.constant 0 : index
    %c0_16 = arith.constant 0 : index
    %35 = vector.load %arg8[%c0_14, %c0_15, %c0_16] : memref<10x10x128xf32, #tpu.memory_space<vmem>>, vector<8x8x128xf32>
    %36 = vector.shape_cast %35 : vector<8x8x128xf32> to vector<64x128xf32>
    %c0_17 = arith.constant 0 : index
    %c0_18 = arith.constant 0 : index
    %c0_19 = arith.constant 0 : index
    %37 = vector.load %arg3[%c0_17, %c0_18, %c0_19] : memref<9x128x128xf32, #tpu.memory_space<vmem>>, vector<1x128x128xf32>
    %38 = vector.shape_cast %37 : vector<1x128x128xf32> to vector<128x128xf32>
    %cst_20 = arith.constant dense<0.000000e+00> : vector<64x128xf32>
    %39 = tpu.matmul %36, %38, %cst_20 {dimension_numbers = #tpu.dot_dimension_numbers<[1], [0], [0], [1], [0, 0, 1, 1], [], []>} : vector<64x128xf32>, vector<128x128xf32>, vector<64x128xf32> -> vector<64x128xf32>
    %40 = arith.addf %34, %39 : vector<64x128xf32>
    %c0_21 = arith.constant 0 : index
    %c1 = arith.constant 1 : index
    %c0_22 = arith.constant 0 : index
    %41 = vector.load %arg8[%c0_21, %c1, %c0_22] : memref<10x10x128xf32, #tpu.memory_space<vmem>>, vector<8x8x128xf32>
    %42 = vector.shape_cast %41 : vector<8x8x128xf32> to vector<64x128xf32>
    %c1_23 = arith.constant 1 : index
    %c0_24 = arith.constant 0 : index
    %c0_25 = arith.constant 0 : index
    %43 = vector.load %arg3[%c1_23, %c0_24, %c0_25] : memref<9x128x128xf32, #tpu.memory_space<vmem>>, vector<1x128x128xf32>
    %44 = vector.shape_cast %43 : vector<1x128x128xf32> to vector<128x128xf32>
    %cst_26 = arith.constant dense<0.000000e+00> : vector<64x128xf32>
    %45 = tpu.matmul %42, %44, %cst_26 {dimension_numbers = #tpu.dot_dimension_numbers<[1], [0], [0], [1], [0, 0, 1, 1], [], []>} : vector<64x128xf32>, vector<128x128xf32>, vector<64x128xf32> -> vector<64x128xf32>
    %46 = arith.addf %40, %45 : vector<64x128xf32>
    %c0_27 = arith.constant 0 : index
    %c2 = arith.constant 2 : index
    %c0_28 = arith.constant 0 : index
    %47 = vector.load %arg8[%c0_27, %c2, %c0_28] : memref<10x10x128xf32, #tpu.memory_space<vmem>>, vector<8x8x128xf32>
    %48 = vector.shape_cast %47 : vector<8x8x128xf32> to vector<64x128xf32>
    %c2_29 = arith.constant 2 : index
    %c0_30 = arith.constant 0 : index
    %c0_31 = arith.constant 0 : index
    %49 = vector.load %arg3[%c2_29, %c0_30, %c0_31] : memref<9x128x128xf32, #tpu.memory_space<vmem>>, vector<1x128x128xf32>
    %50 = vector.shape_cast %49 : vector<1x128x128xf32> to vector<128x128xf32>
    %cst_32 = arith.constant dense<0.000000e+00> : vector<64x128xf32>
    %51 = tpu.matmul %48, %50, %cst_32 {dimension_numbers = #tpu.dot_dimension_numbers<[1], [0], [0], [1], [0, 0, 1, 1], [], []>} : vector<64x128xf32>, vector<128x128xf32>, vector<64x128xf32> -> vector<64x128xf32>
    %52 = arith.addf %46, %51 : vector<64x128xf32>
    %c1_33 = arith.constant 1 : index
    %c0_34 = arith.constant 0 : index
    %c0_35 = arith.constant 0 : index
    %53 = vector.load %arg8[%c1_33, %c0_34, %c0_35] : memref<10x10x128xf32, #tpu.memory_space<vmem>>, vector<8x8x128xf32>
    %54 = vector.shape_cast %53 : vector<8x8x128xf32> to vector<64x128xf32>
    %c3 = arith.constant 3 : index
    %c0_36 = arith.constant 0 : index
    %c0_37 = arith.constant 0 : index
    %55 = vector.load %arg3[%c3, %c0_36, %c0_37] : memref<9x128x128xf32, #tpu.memory_space<vmem>>, vector<1x128x128xf32>
    %56 = vector.shape_cast %55 : vector<1x128x128xf32> to vector<128x128xf32>
    %cst_38 = arith.constant dense<0.000000e+00> : vector<64x128xf32>
    %57 = tpu.matmul %54, %56, %cst_38 {dimension_numbers = #tpu.dot_dimension_numbers<[1], [0], [0], [1], [0, 0, 1, 1], [], []>} : vector<64x128xf32>, vector<128x128xf32>, vector<64x128xf32> -> vector<64x128xf32>
    %58 = arith.addf %52, %57 : vector<64x128xf32>
    %c1_39 = arith.constant 1 : index
    %c1_40 = arith.constant 1 : index
    %c0_41 = arith.constant 0 : index
    %59 = vector.load %arg8[%c1_39, %c1_40, %c0_41] : memref<10x10x128xf32, #tpu.memory_space<vmem>>, vector<8x8x128xf32>
    %60 = vector.shape_cast %59 : vector<8x8x128xf32> to vector<64x128xf32>
    %c4 = arith.constant 4 : index
    %c0_42 = arith.constant 0 : index
    %c0_43 = arith.constant 0 : index
    %61 = vector.load %arg3[%c4, %c0_42, %c0_43] : memref<9x128x128xf32, #tpu.memory_space<vmem>>, vector<1x128x128xf32>
    %62 = vector.shape_cast %61 : vector<1x128x128xf32> to vector<128x128xf32>
    %cst_44 = arith.constant dense<0.000000e+00> : vector<64x128xf32>
    %63 = tpu.matmul %60, %62, %cst_44 {dimension_numbers = #tpu.dot_dimension_numbers<[1], [0], [0], [1], [0, 0, 1, 1], [], []>} : vector<64x128xf32>, vector<128x128xf32>, vector<64x128xf32> -> vector<64x128xf32>
    %64 = arith.addf %58, %63 : vector<64x128xf32>
    %c1_45 = arith.constant 1 : index
    %c2_46 = arith.constant 2 : index
    %c0_47 = arith.constant 0 : index
    %65 = vector.load %arg8[%c1_45, %c2_46, %c0_47] : memref<10x10x128xf32, #tpu.memory_space<vmem>>, vector<8x8x128xf32>
    %66 = vector.shape_cast %65 : vector<8x8x128xf32> to vector<64x128xf32>
    %c5 = arith.constant 5 : index
    %c0_48 = arith.constant 0 : index
    %c0_49 = arith.constant 0 : index
    %67 = vector.load %arg3[%c5, %c0_48, %c0_49] : memref<9x128x128xf32, #tpu.memory_space<vmem>>, vector<1x128x128xf32>
    %68 = vector.shape_cast %67 : vector<1x128x128xf32> to vector<128x128xf32>
    %cst_50 = arith.constant dense<0.000000e+00> : vector<64x128xf32>
    %69 = tpu.matmul %66, %68, %cst_50 {dimension_numbers = #tpu.dot_dimension_numbers<[1], [0], [0], [1], [0, 0, 1, 1], [], []>} : vector<64x128xf32>, vector<128x128xf32>, vector<64x128xf32> -> vector<64x128xf32>
    %70 = arith.addf %64, %69 : vector<64x128xf32>
    %c2_51 = arith.constant 2 : index
    %c0_52 = arith.constant 0 : index
    %c0_53 = arith.constant 0 : index
    %71 = vector.load %arg8[%c2_51, %c0_52, %c0_53] : memref<10x10x128xf32, #tpu.memory_space<vmem>>, vector<8x8x128xf32>
    %72 = vector.shape_cast %71 : vector<8x8x128xf32> to vector<64x128xf32>
    %c6 = arith.constant 6 : index
    %c0_54 = arith.constant 0 : index
    %c0_55 = arith.constant 0 : index
    %73 = vector.load %arg3[%c6, %c0_54, %c0_55] : memref<9x128x128xf32, #tpu.memory_space<vmem>>, vector<1x128x128xf32>
    %74 = vector.shape_cast %73 : vector<1x128x128xf32> to vector<128x128xf32>
    %cst_56 = arith.constant dense<0.000000e+00> : vector<64x128xf32>
    %75 = tpu.matmul %72, %74, %cst_56 {dimension_numbers = #tpu.dot_dimension_numbers<[1], [0], [0], [1], [0, 0, 1, 1], [], []>} : vector<64x128xf32>, vector<128x128xf32>, vector<64x128xf32> -> vector<64x128xf32>
    %76 = arith.addf %70, %75 : vector<64x128xf32>
    %c2_57 = arith.constant 2 : index
    %c1_58 = arith.constant 1 : index
    %c0_59 = arith.constant 0 : index
    %77 = vector.load %arg8[%c2_57, %c1_58, %c0_59] : memref<10x10x128xf32, #tpu.memory_space<vmem>>, vector<8x8x128xf32>
    %78 = vector.shape_cast %77 : vector<8x8x128xf32> to vector<64x128xf32>
    %c7 = arith.constant 7 : index
    %c0_60 = arith.constant 0 : index
    %c0_61 = arith.constant 0 : index
    %79 = vector.load %arg3[%c7, %c0_60, %c0_61] : memref<9x128x128xf32, #tpu.memory_space<vmem>>, vector<1x128x128xf32>
    %80 = vector.shape_cast %79 : vector<1x128x128xf32> to vector<128x128xf32>
    %cst_62 = arith.constant dense<0.000000e+00> : vector<64x128xf32>
    %81 = tpu.matmul %78, %80, %cst_62 {dimension_numbers = #tpu.dot_dimension_numbers<[1], [0], [0], [1], [0, 0, 1, 1], [], []>} : vector<64x128xf32>, vector<128x128xf32>, vector<64x128xf32> -> vector<64x128xf32>
    %82 = arith.addf %76, %81 : vector<64x128xf32>
    %c2_63 = arith.constant 2 : index
    %c2_64 = arith.constant 2 : index
    %c0_65 = arith.constant 0 : index
    %83 = vector.load %arg8[%c2_63, %c2_64, %c0_65] : memref<10x10x128xf32, #tpu.memory_space<vmem>>, vector<8x8x128xf32>
    %84 = vector.shape_cast %83 : vector<8x8x128xf32> to vector<64x128xf32>
    %c8 = arith.constant 8 : index
    %c0_66 = arith.constant 0 : index
    %c0_67 = arith.constant 0 : index
    %85 = vector.load %arg3[%c8, %c0_66, %c0_67] : memref<9x128x128xf32, #tpu.memory_space<vmem>>, vector<1x128x128xf32>
    %86 = vector.shape_cast %85 : vector<1x128x128xf32> to vector<128x128xf32>
    %cst_68 = arith.constant dense<0.000000e+00> : vector<64x128xf32>
    %87 = tpu.matmul %84, %86, %cst_68 {dimension_numbers = #tpu.dot_dimension_numbers<[1], [0], [0], [1], [0, 0, 1, 1], [], []>} : vector<64x128xf32>, vector<128x128xf32>, vector<64x128xf32> -> vector<64x128xf32>
    %88 = arith.addf %82, %87 : vector<64x128xf32>
    %89 = vector.shape_cast %88 : vector<64x128xf32> to vector<1x8x8x128xf32>
    %c0_69 = arith.constant 0 : index
    %c0_70 = arith.constant 0 : index
    %c0_71 = arith.constant 0 : index
    %c0_72 = arith.constant 0 : index
    %90 = vector.load %arg6[%c0_69, %c0_70, %c0_71, %c0_72] : memref<1x8x8x128xf32, #tpu.memory_space<vmem>>, vector<1x8x8x128xf32>
    tpu.vector_store %arg6[%c0_69, %c0_70, %c0_71, %c0_72], %89 {strides = array<i32>} : memref<1x8x8x128xf32, #tpu.memory_space<vmem>>, vector<1x8x8x128xf32>,
    %cst_73 = arith.constant dense<0.000000e+00> : vector<128xf32>
    %91 = vector.multi_reduction <add>, %88, %cst_73 [0] : vector<64x128xf32> to vector<128xf32>
    %92 = vector.shape_cast %91 : vector<128xf32> to vector<1x128xf32>
    %93 = arith.mulf %88, %88 : vector<64x128xf32>
    %cst_74 = arith.constant dense<0.000000e+00> : vector<128xf32>
    %94 = vector.multi_reduction <add>, %93, %cst_74 [0] : vector<64x128xf32> to vector<128xf32>
    %95 = vector.shape_cast %94 : vector<128xf32> to vector<1x128xf32>
    %96 = tpu.concatenate %92, %95 in 0 : vector<1x128xf32>, vector<1x128xf32> -> vector<2x128xf32>
    %97 = vector.shape_cast %96 : vector<2x128xf32> to vector<1x1x2x128xf32>
    %c0_75 = arith.constant 0 : index
    %c0_76 = arith.constant 0 : index
    %c0_77 = arith.constant 0 : index
    %c0_78 = arith.constant 0 : index
    %98 = vector.load %arg7[%c0_75, %c0_76, %c0_77, %c0_78] : memref<1x1x2x128xf32, #tpu.memory_space<vmem>>, vector<1x1x2x128xf32>
    tpu.vector_store %arg7[%c0_75, %c0_76, %c0_77, %c0_78], %97 {strides = array<i32>} : memref<1x1x2x128xf32, #tpu.memory_space<vmem>>, vector<1x1x2x128xf32>,
    return
  }
  func.func @transform_0(%arg0: i32, %arg1: i32) -> (i32, i32, i32, i32) {
    %c0_i32 = arith.constant 0 : i32
    %c0_i32_0 = arith.constant 0 : i32
    %c0_i32_1 = arith.constant 0 : i32
    %c0_i32_2 = arith.constant 0 : i32
    return %arg0, %c0_i32, %c0_i32_0, %c0_i32_1 : i32, i32, i32, i32
  }
  func.func @transform_1(%arg0: i32, %arg1: i32) -> (i32, i32, i32) {
    %c0_i32 = arith.constant 0 : i32
    %c0_i32_0 = arith.constant 0 : i32
    %c0_i32_1 = arith.constant 0 : i32
    %c0_i32_2 = arith.constant 0 : i32
    return %c0_i32, %c0_i32_0, %c0_i32_1 : i32, i32, i32
  }
  func.func @transform_2(%arg0: i32, %arg1: i32) -> (i32, i32) {
    %c0_i32 = arith.constant 0 : i32
    %c0_i32_0 = arith.constant 0 : i32
    %c0_i32_1 = arith.constant 0 : i32
    return %c0_i32, %c0_i32_0 : i32, i32
  }
  func.func @transform_3(%arg0: i32, %arg1: i32) -> (i32, i32) {
    %c0_i32 = arith.constant 0 : i32
    %c0_i32_0 = arith.constant 0 : i32
    %c0_i32_1 = arith.constant 0 : i32
    return %c0_i32, %c0_i32_0 : i32, i32
  }
  func.func @transform_4(%arg0: i32, %arg1: i32) -> (i32, i32, i32, i32) {
    %c0_i32 = arith.constant 0 : i32
    %c0_i32_0 = arith.constant 0 : i32
    %c0_i32_1 = arith.constant 0 : i32
    return %arg0, %arg1, %c0_i32, %c0_i32_0 : i32, i32, i32, i32
  }
  func.func @transform_5(%arg0: i32, %arg1: i32) -> (i32, i32, i32, i32) {
    %c0_i32 = arith.constant 0 : i32
    %c0_i32_0 = arith.constant 0 : i32
    %c0_i32_1 = arith.constant 0 : i32
    return %arg0, %arg1, %c0_i32, %c0_i32_0 : i32, i32, i32, i32
  }
}

module attributes {stable_mosaic.version = 11 : i64} {
  func.func @kernel(%arg0: i32, %arg1: memref<128x128xf32, #tpu.memory_space<vmem>>, %arg2: memref<128x128xf32, #tpu.memory_space<vmem>>, %arg3: memref<1x128xf32, #tpu.memory_space<vmem>>, %arg4: memref<1x128xf32, #tpu.memory_space<vmem>>, %arg5: memref<128x128xf32, #tpu.memory_space<vmem>>, %arg6: memref<1x2x128xf32, #tpu.memory_space<vmem>>) attributes {dimension_semantics = [#tpu.dimension_semantics<parallel>], iteration_bounds = array<i64: 1>, scalar_prefetch = 0 : i64, scratch_operands = 0 : i64, tpu.core_type = #tpu.core_type<tc>, window_params = [{transform_indices = @transform_0, window_bounds = array<i64: 128, 128>}, {pipeline_mode = #tpu.pipeline_mode<synchronous>, transform_indices = @transform_1, window_bounds = array<i64: 128, 128>}, {pipeline_mode = #tpu.pipeline_mode<synchronous>, transform_indices = @transform_2, window_bounds = array<i64: 1, 128>}, {pipeline_mode = #tpu.pipeline_mode<synchronous>, transform_indices = @transform_3, window_bounds = array<i64: 1, 128>}, {transform_indices = @transform_4, window_bounds = array<i64: 128, 128>}, {transform_indices = @transform_5, window_bounds = array<i64: 1, 2, 128>}]} {
    %c0 = arith.constant 0 : index
    %c0_0 = arith.constant 0 : index
    %0 = vector.load %arg1[%c0, %c0_0] : memref<128x128xf32, #tpu.memory_space<vmem>>, vector<128x128xf32>
    %c0_1 = arith.constant 0 : index
    %c0_2 = arith.constant 0 : index
    %1 = vector.load %arg3[%c0_1, %c0_2] : memref<1x128xf32, #tpu.memory_space<vmem>>, vector<1x128xf32>
    %2 = vector.broadcast %1 : vector<1x128xf32> to vector<128x128xf32>
    %3 = arith.mulf %0, %2 : vector<128x128xf32>
    %c0_3 = arith.constant 0 : index
    %c0_4 = arith.constant 0 : index
    %4 = vector.load %arg4[%c0_3, %c0_4] : memref<1x128xf32, #tpu.memory_space<vmem>>, vector<1x128xf32>
    %5 = vector.broadcast %4 : vector<1x128xf32> to vector<128x128xf32>
    %6 = arith.addf %3, %5 : vector<128x128xf32>
    %cst = arith.constant 0.000000e+00 : f32
    %7 = vector.broadcast %cst : f32 to vector<128x128xf32>
    %8 = arith.maximumf %6, %7 : vector<128x128xf32>
    %c0_5 = arith.constant 0 : index
    %c0_6 = arith.constant 0 : index
    %9 = vector.load %arg2[%c0_5, %c0_6] : memref<128x128xf32, #tpu.memory_space<vmem>>, vector<128x128xf32>
    %cst_7 = arith.constant dense<0.000000e+00> : vector<128x128xf32>
    %10 = tpu.matmul %8, %9, %cst_7 {dimension_numbers = #tpu.dot_dimension_numbers<[1], [0], [0], [1], [0, 0, 1, 1], [], []>} : vector<128x128xf32>, vector<128x128xf32>, vector<128x128xf32> -> vector<128x128xf32>
    %c0_8 = arith.constant 0 : index
    %c0_9 = arith.constant 0 : index
    %11 = vector.load %arg5[%c0_8, %c0_9] : memref<128x128xf32, #tpu.memory_space<vmem>>, vector<128x128xf32>
    tpu.vector_store %arg5[%c0_8, %c0_9], %10 {strides = array<i32>} : memref<128x128xf32, #tpu.memory_space<vmem>>, vector<128x128xf32>,
    %cst_10 = arith.constant dense<0.000000e+00> : vector<128xf32>
    %12 = vector.multi_reduction <add>, %10, %cst_10 [0] : vector<128x128xf32> to vector<128xf32>
    %13 = vector.shape_cast %12 : vector<128xf32> to vector<1x128xf32>
    %14 = arith.mulf %10, %10 : vector<128x128xf32>
    %cst_11 = arith.constant dense<0.000000e+00> : vector<128xf32>
    %15 = vector.multi_reduction <add>, %14, %cst_11 [0] : vector<128x128xf32> to vector<128xf32>
    %16 = vector.shape_cast %15 : vector<128xf32> to vector<1x128xf32>
    %17 = tpu.concatenate %13, %16 in 0 : vector<1x128xf32>, vector<1x128xf32> -> vector<2x128xf32>
    %18 = vector.shape_cast %17 : vector<2x128xf32> to vector<1x2x128xf32>
    %c0_12 = arith.constant 0 : index
    %c0_13 = arith.constant 0 : index
    %c0_14 = arith.constant 0 : index
    %19 = vector.load %arg6[%c0_12, %c0_13, %c0_14] : memref<1x2x128xf32, #tpu.memory_space<vmem>>, vector<1x2x128xf32>
    tpu.vector_store %arg6[%c0_12, %c0_13, %c0_14], %18 {strides = array<i32>} : memref<1x2x128xf32, #tpu.memory_space<vmem>>, vector<1x2x128xf32>,
    return
  }
  func.func @transform_0(%arg0: i32) -> (i32, i32) {
    %c0_i32 = arith.constant 0 : i32
    %c0_i32_0 = arith.constant 0 : i32
    return %arg0, %c0_i32 : i32, i32
  }
  func.func @transform_1(%arg0: i32) -> (i32, i32) {
    %c0_i32 = arith.constant 0 : i32
    %c0_i32_0 = arith.constant 0 : i32
    %c0_i32_1 = arith.constant 0 : i32
    return %c0_i32, %c0_i32_0 : i32, i32
  }
  func.func @transform_2(%arg0: i32) -> (i32, i32) {
    %c0_i32 = arith.constant 0 : i32
    %c0_i32_0 = arith.constant 0 : i32
    %c0_i32_1 = arith.constant 0 : i32
    return %c0_i32, %c0_i32_0 : i32, i32
  }
  func.func @transform_3(%arg0: i32) -> (i32, i32) {
    %c0_i32 = arith.constant 0 : i32
    %c0_i32_0 = arith.constant 0 : i32
    %c0_i32_1 = arith.constant 0 : i32
    return %c0_i32, %c0_i32_0 : i32, i32
  }
  func.func @transform_4(%arg0: i32) -> (i32, i32) {
    %c0_i32 = arith.constant 0 : i32
    %c0_i32_0 = arith.constant 0 : i32
    return %arg0, %c0_i32 : i32, i32
  }
  func.func @transform_5(%arg0: i32) -> (i32, i32, i32) {
    %c0_i32 = arith.constant 0 : i32
    %c0_i32_0 = arith.constant 0 : i32
    %c0_i32_1 = arith.constant 0 : i32
    return %arg0, %c0_i32, %c0_i32_0 : i32, i32, i32
  }
}

module attributes {stable_mosaic.version = 11 : i64} {
  func.func @kernel(%arg0: i32, %arg1: memref<128x128xf32, #tpu.memory_space<vmem>>, %arg2: memref<1x128xf32, #tpu.memory_space<vmem>>, %arg3: memref<1x128xf32, #tpu.memory_space<vmem>>, %arg4: memref<128x128xf32, #tpu.memory_space<vmem>>, %arg5: memref<128x128xf32, #tpu.memory_space<vmem>>, %arg6: memref<128x128xf32, #tpu.memory_space<vmem>>) attributes {dimension_semantics = [#tpu.dimension_semantics<parallel>], iteration_bounds = array<i64: 1>, scalar_prefetch = 0 : i64, scratch_operands = 0 : i64, tpu.core_type = #tpu.core_type<tc>, window_params = [{transform_indices = @transform_0, window_bounds = array<i64: 128, 128>}, {pipeline_mode = #tpu.pipeline_mode<synchronous>, transform_indices = @transform_1, window_bounds = array<i64: 1, 128>}, {pipeline_mode = #tpu.pipeline_mode<synchronous>, transform_indices = @transform_2, window_bounds = array<i64: 1, 128>}, {transform_indices = @transform_3, window_bounds = array<i64: 128, 128>}, {pipeline_mode = #tpu.pipeline_mode<synchronous>, transform_indices = @transform_4, window_bounds = array<i64: 128, 128>}, {transform_indices = @transform_5, window_bounds = array<i64: 128, 128>}]} {
    %c0 = arith.constant 0 : index
    %c0_0 = arith.constant 0 : index
    %0 = vector.load %arg4[%c0, %c0_0] : memref<128x128xf32, #tpu.memory_space<vmem>>, vector<128x128xf32>
    %c0_1 = arith.constant 0 : index
    %c0_2 = arith.constant 0 : index
    %1 = vector.load %arg5[%c0_1, %c0_2] : memref<128x128xf32, #tpu.memory_space<vmem>>, vector<128x128xf32>
    %cst = arith.constant dense<0.000000e+00> : vector<128x128xf32>
    %2 = tpu.matmul %0, %1, %cst {dimension_numbers = #tpu.dot_dimension_numbers<[1], [0], [0], [1], [0, 0, 1, 1], [], []>} : vector<128x128xf32>, vector<128x128xf32>, vector<128x128xf32> -> vector<128x128xf32>
    %c0_3 = arith.constant 0 : index
    %c0_4 = arith.constant 0 : index
    %3 = vector.load %arg1[%c0_3, %c0_4] : memref<128x128xf32, #tpu.memory_space<vmem>>, vector<128x128xf32>
    %c0_5 = arith.constant 0 : index
    %c0_6 = arith.constant 0 : index
    %4 = vector.load %arg2[%c0_5, %c0_6] : memref<1x128xf32, #tpu.memory_space<vmem>>, vector<1x128xf32>
    %5 = vector.broadcast %4 : vector<1x128xf32> to vector<128x128xf32>
    %6 = arith.mulf %3, %5 : vector<128x128xf32>
    %c0_7 = arith.constant 0 : index
    %c0_8 = arith.constant 0 : index
    %7 = vector.load %arg3[%c0_7, %c0_8] : memref<1x128xf32, #tpu.memory_space<vmem>>, vector<1x128xf32>
    %8 = vector.broadcast %7 : vector<1x128xf32> to vector<128x128xf32>
    %9 = arith.addf %6, %8 : vector<128x128xf32>
    %10 = arith.addf %9, %2 : vector<128x128xf32>
    %cst_9 = arith.constant 0.000000e+00 : f32
    %11 = vector.broadcast %cst_9 : f32 to vector<128x128xf32>
    %12 = arith.maximumf %10, %11 : vector<128x128xf32>
    %c0_10 = arith.constant 0 : index
    %c0_11 = arith.constant 0 : index
    %13 = vector.load %arg6[%c0_10, %c0_11] : memref<128x128xf32, #tpu.memory_space<vmem>>, vector<128x128xf32>
    tpu.vector_store %arg6[%c0_10, %c0_11], %12 {strides = array<i32>} : memref<128x128xf32, #tpu.memory_space<vmem>>, vector<128x128xf32>,
    return
  }
  func.func @transform_0(%arg0: i32) -> (i32, i32) {
    %c0_i32 = arith.constant 0 : i32
    %c0_i32_0 = arith.constant 0 : i32
    return %arg0, %c0_i32 : i32, i32
  }
  func.func @transform_1(%arg0: i32) -> (i32, i32) {
    %c0_i32 = arith.constant 0 : i32
    %c0_i32_0 = arith.constant 0 : i32
    %c0_i32_1 = arith.constant 0 : i32
    return %c0_i32, %c0_i32_0 : i32, i32
  }
  func.func @transform_2(%arg0: i32) -> (i32, i32) {
    %c0_i32 = arith.constant 0 : i32
    %c0_i32_0 = arith.constant 0 : i32
    %c0_i32_1 = arith.constant 0 : i32
    return %c0_i32, %c0_i32_0 : i32, i32
  }
  func.func @transform_3(%arg0: i32) -> (i32, i32) {
    %c0_i32 = arith.constant 0 : i32
    %c0_i32_0 = arith.constant 0 : i32
    return %arg0, %c0_i32 : i32, i32
  }
  func.func @transform_4(%arg0: i32) -> (i32, i32) {
    %c0_i32 = arith.constant 0 : i32
    %c0_i32_0 = arith.constant 0 : i32
    %c0_i32_1 = arith.constant 0 : i32
    return %c0_i32, %c0_i32_0 : i32, i32
  }
  func.func @transform_5(%arg0: i32) -> (i32, i32) {
    %c0_i32 = arith.constant 0 : i32
    %c0_i32_0 = arith.constant 0 : i32
    return %arg0, %c0_i32 : i32, i32
  }
}

</mosaic_0001>

<bundles_post_ra>
// kernel: conv_block_forward.7
= control target key start
LH: loop header
LB: loop body
LE: loop exit
PB: predicated region body
PF: predicated region fallthrough
CT: control target
= control target key end

     0   :  { %s720_s0 = inlined_call_operand.vmem [shape: f32[128,128], index: 0, kind: input, shape index: {}]   ;;  %s721_s1 = inlined_call_operand.vmem [shape: f32[1,128], index: 1, kind: input, shape index: {}]   ;;  %s722_s2 = inlined_call_operand.vmem [shape: f32[1,128], index: 2, kind: input, shape index: {}]   ;;  %s723_s3 = inlined_call_operand.vmem [shape: f32[128,128], index: 3, kind: input, shape index: {}]   ;;  %s724_s4 = inlined_call_operand.vmem [shape: f32[128,128], index: 4, kind: input, shape index: {}]   ;;  %s725_s5 = inlined_call_operand.hbm [shape: f32[128,128], index: 5, kind: output, shape index: {}]  }
   0x1   :  { %v37_v0 = vld [vmem:[%s724_s4] sm:$0xff]  ;;  %v38_v1 = vld [vmem:[%s724_s4 + $0x8] sm:$0xff]  ;;  %v39_v2 = vld [vmem:[%s724_s4 + $0x10] sm:$0xff] }
   0x2   :  { %v414_v3 = vpack.c.bf16 %v38_v1, %v37_v0  ;;  %v40_v4 = vld [vmem:[%s724_s4 + $0x18] sm:$0xff]  ;;  %v41_v6 = vld [vmem:[%s724_s4 + $0x20] sm:$0xff]  ;;  %v42_v7 = vld [vmem:[%s724_s4 + $0x28] sm:$0xff] }
   0x3   :  { %v418_v5 = vpack.c.bf16 %v40_v4, %v39_v2  ;;  %v422_v8 = vpack.c.bf16 %v42_v7, %v41_v6  ;;  %v21_v9 = vld [vmem:[%s723_s3] sm:$0xff]  ;;  %v43_v11 = vld [vmem:[%s724_s4 + $0x30] sm:$0xff]  ;;  %v44_v12 = vld [vmem:[%s724_s4 + $0x38] sm:$0xff] }
   0x4   :  { %415 = vmatprep.subr.bf16.mxu0 %v414_v3  ;;  %446 = vmatprep.subr.bf16.mxu1 %v414_v3  ;;  %v29_v10 = vld [vmem:[%s723_s3 + $0x40] sm:$0xff]  ;;  %v426_v13 = vpack.c.bf16 %v44_v12, %v43_v11  ;;  %v46_v15 = vld [vmem:[%s724_s4 + $0x48] sm:$0xff] }
   0x5   :  { %417 = vmatpush3.bf16.msra.mxu0 %v414_v3  ;;  %454 = vmatpush3.bf16.msra.mxu1 %v414_v3  ;;  %v45_v14 = vld [vmem:[%s724_s4 + $0x40] sm:$0xff] }
   0x6   :  { %419 = vmatprep.subr.bf16.mxu0 %v418_v5  ;;  %447 = vmatprep.subr.bf16.mxu1 %v418_v5 }
   0x7   :  { %390 = vmatprep.mubr.f32.mxu0 %v21_v9  ;;  %402 = vmatprep.mubr.f32.mxu1 %v29_v10 }
   0x9   :  { %421 = vmatpush3.bf16.msra.mxu0 %v418_v5  ;;  %455 = vmatpush3.bf16.msra.mxu1 %v418_v5 }
   0xa   :  { %423 = vmatprep.subr.bf16.mxu0 %v422_v8  ;;  %448 = vmatprep.subr.bf16.mxu1 %v422_v8 }
   0xb   :  { %10 = vsyncpa [#allocation3], 0  ;;  %v430_v16 = vpack.c.bf16 %v46_v15, %v45_v14  ;;  %v47_v17 = vld [vmem:[%s724_s4 + $0x50] sm:$0xff]  ;;  %v48_v18 = vld [vmem:[%s724_s4 + $0x58] sm:$0xff] }
   0xc   :  { %v434_v19 = vpack.c.bf16 %v48_v18, %v47_v17  ;;  %v49_v20 = vld [vmem:[%s724_s4 + $0x60] sm:$0xff]  ;;  %v50_v21 = vld [vmem:[%s724_s4 + $0x68] sm:$0xff]  ;;  %v51_v23 = vld [vmem:[%s724_s4 + $0x70] sm:$0xff] }
   0xd   :  { %425 = vmatpush3.bf16.msra.mxu0 %v422_v8  ;;  %456 = vmatpush3.bf16.msra.mxu1 %v422_v8  ;;  %v438_v22 = vpack.c.bf16 %v50_v21, %v49_v20  ;;  %v52_v24 = vld [vmem:[%s724_s4 + $0x78] sm:$0xff]  ;;  %v22_v26 = vld [vmem:[%s723_s3 + $0x8] sm:$0xff]  ;;  %v23_v28 = vld [vmem:[%s723_s3 + $0x10] sm:$0xff] }
   0xe   :  { %427 = vmatprep.subr.bf16.mxu0 %v426_v13  ;;  %449 = vmatprep.subr.bf16.mxu1 %v426_v13  ;;  %v442_v25 = vpack.c.bf16 %v52_v24, %v51_v23  ;;  %v30_v27 = vld [vmem:[%s723_s3 + $0x48] sm:$0xff]  ;;  %v31_v29 = vld [vmem:[%s723_s3 + $0x50] sm:$0xff]  ;;  %v24_v30 = vld [vmem:[%s723_s3 + $0x18] sm:$0xff] }
   0xf   :  { %v32_v31 = vld [vmem:[%s723_s3 + $0x58] sm:$0xff]  ;;  %v25_v32 = vld [vmem:[%s723_s3 + $0x20] sm:$0xff]  ;;  %v26_v34 = vld [vmem:[%s723_s3 + $0x28] sm:$0xff] }
  0x10   :  { %v33_v33 = vld [vmem:[%s723_s3 + $0x60] sm:$0xff]  ;;  %v34_v35 = vld [vmem:[%s723_s3 + $0x68] sm:$0xff]  ;;  %v27_v36 = vld [vmem:[%s723_s3 + $0x30] sm:$0xff] }
  0x11   :  { %429 = vmatpush3.bf16.msra.mxu0 %v426_v13  ;;  %457 = vmatpush3.bf16.msra.mxu1 %v426_v13  ;;  %v35_v37 = vld [vmem:[%s723_s3 + $0x70] sm:$0xff]  ;;  %v28_v38 = vld [vmem:[%s723_s3 + $0x38] sm:$0xff]  ;;  %v199_v40 = vld [vmem:[%s720_s0 + $0x8] sm:$0xff] }
  0x12   :  { %431 = vmatprep.subr.bf16.mxu0 %v430_v16  ;;  %450 = vmatprep.subr.bf16.mxu1 %v430_v16  ;;  %v36_v39 = vld [vmem:[%s723_s3 + $0x78] sm:$0xff]  ;;  %v624_v41 = vld [vmem:[%s721_s1] ss:$0 sm:$0xff]  ;;  %v207_v42 = vld [vmem:[%s720_s0 + $0x48] sm:$0xff] }
  0x13   :  { %v198_v43 = vld [vmem:[%s720_s0] sm:$0xff]  ;;  %v222_v45 = vmul.f32 %v624_v41, %v199_v40  ;;  %v230_v46 = vmul.f32 %v624_v41, %v207_v42  ;;  %v201_v50 = vld [vmem:[%s720_s0 + $0x18] sm:$0xff]  ;;  %v200_v52 = vld [vmem:[%s720_s0 + $0x10] sm:$0xff] }
  0x14   :  { %v206_v44 = vld [vmem:[%s720_s0 + $0x40] sm:$0xff]  ;;  %v221_v48 = vmul.f32 %v624_v41, %v198_v43  ;;  %v209_v51 = vld [vmem:[%s720_s0 + $0x58] sm:$0xff]  ;;  %v208_v53 = vld [vmem:[%s720_s0 + $0x50] sm:$0xff]  ;;  %v224_v58 = vmul.f32 %v624_v41, %v201_v50  ;;  %v223_v0 = vmul.f32 %v624_v41, %v200_v52 }
  0x15   :  { %433 = vmatpush3.bf16.msra.mxu0 %v430_v16  ;;  %458 = vmatpush3.bf16.msra.mxu1 %v430_v16  ;;  %v640_v47 = vld [vmem:[%s722_s2] ss:$0 sm:$0xff]  ;;  %v229_v49 = vmul.f32 %v624_v41, %v206_v44  ;;  %v203_v54 = vld [vmem:[%s720_s0 + $0x28] sm:$0xff]  ;;  %v232_v59 = vmul.f32 %v624_v41, %v209_v51  ;;  %v231_v1 = vmul.f32 %v624_v41, %v208_v53  ;;  %v205_v18 = vld [vmem:[%s720_s0 + $0x38] sm:$0xff] }
  0x16   :  { %435 = vmatprep.subr.bf16.mxu0 %v434_v19  ;;  %451 = vmatprep.subr.bf16.mxu1 %v434_v19  ;;  %v211_v55 = vld [vmem:[%s720_s0 + $0x68] sm:$0xff]  ;;  %v245_v56 = vadd.f32 %v640_v47, %v222_v45  ;;  %v253_v57 = vadd.f32 %v640_v47, %v230_v46  ;;  %v202_v60 = vld [vmem:[%s720_s0 + $0x20] sm:$0xff]  ;;  %v244_v62 = vadd.f32 %v640_v47, %v221_v48  ;;  %v204_v24 = vld [vmem:[%s720_s0 + $0x30] sm:$0xff] }
  0x17   :  { %v210_v61 = vld [vmem:[%s720_s0 + $0x60] sm:$0xff]  ;;  %v252_v63 = vadd.f32 %v640_v47, %v229_v49  ;;  %v226_v2 = vmul.f32 %v624_v41, %v203_v54  ;;  %v234_v3 = vmul.f32 %v624_v41, %v211_v55  ;;  %v225_v6 = vmul.f32 %v624_v41, %v202_v60 }
  0x18   :  { %v233_v7 = vmul.f32 %v624_v41, %v210_v61  ;;  %v247_v12 = vadd.f32 %v640_v47, %v224_v58  ;;  %v255_v13 = vadd.f32 %v640_v47, %v232_v59  ;;  %v246_v16 = vadd.f32 %v640_v47, %v223_v0 }
  0x19   :  { %437 = vmatpush3.bf16.msra.mxu0 %v434_v19  ;;  %459 = vmatpush3.bf16.msra.mxu1 %v434_v19  ;;  %v254_v17 = vadd.f32 %v640_v47, %v231_v1  ;;  %v213_v19 = vld [vmem:[%s720_s0 + $0x78] sm:$0xff]  ;;  %v257_v23 = vadd.f32 %v640_v47, %v234_v3  ;;  %v227_v40 = vmul.f32 %v624_v41, %v204_v24 }
  0x1a   :  { %439 = vmatprep.subr.bf16.mxu0 %v438_v22  ;;  %452 = vmatprep.subr.bf16.mxu1 %v438_v22 }
  0x1d   :  { %441 = vmatpush3.bf16.msra.mxu0 %v438_v22  ;;  %460 = vmatpush3.bf16.msra.mxu1 %v438_v22  ;;  %v249_v22 = vadd.f32 %v640_v47, %v226_v2 }
  0x1e   :  { %443 = vmatprep.subr.bf16.mxu0 %v442_v25  ;;  %453 = vmatprep.subr.bf16.mxu1 %v442_v25 }
  0x21   :  { %445 = vmatpush3.bf16.msra.mxu0 %v442_v25  ;;  %461 = vmatpush3.bf16.msra.mxu1 %v442_v25  ;;  %v212_v25 = vld [vmem:[%s720_s0 + $0x70] sm:$0xff]  ;;  %s489_s0 = smov [#allocation2]  }
  0x22   :  { %v235_v42 = vmul.f32 %v624_v41, %v212_v25  ;;  %s313_s12 = sshll.u32 %s489_s0, 4  ;;  %s314_s12 = int_to_ptr.vmem [resolvable:$true] %s313_s12 }
  0x23   :  { %s465_s3 = scalar_lea.vmem %s314_s12, 2048  ;;  %p470_p1 = scmp.lt.s32.totalorder %s314_s12, %s314_s12 }
  0x24   :  { %391 = vmatmul.mubr.f32.vlgmr.msra.gmra.mrb[0].mxu0 %v22_v26  ;;  %403 = vmatmul.mubr.f32.vlgmr.msra.gmra.mrb[0].mxu1 %v30_v27  ;;  %v258_v58 = vadd.f32 %v640_v47, %v235_v42  ;;  %p466_p0 = scmp.ne.s32.totalorder %s314_s12, %s465_s3  ;;  %p471_p2 = scmp.lt.s32.totalorder %s465_s3, %s465_s3 }
  0x25   :  { %393 = vmatprep.mubr.f32.mxu0 %v23_v28  ;;  %405 = vmatprep.mubr.f32.mxu1 %v31_v29 }
  0x26   :  { %p472_p3 = por %p471_p2, %p470_p1 }
  0x28   :  { %394 = vmatmul.mubr.f32.gmra.mrb[2].mxu0 %v24_v30  ;;  %406 = vmatmul.mubr.f32.gmra.mrb[2].mxu1 %v32_v31  ;;  %v248_v30 = vadd.f32 %v640_v47, %v225_v6  ;;  %v256_v31 = vadd.f32 %v640_v47, %v233_v7  ;;  %p473_p4 = pnand %p472_p3, %p466_p0 }
  0x29   :  { %396 = vmatprep.mubr.f32.mxu0 %v25_v32  ;;  %408 = vmatprep.mubr.f32.mxu1 %v33_v33 }
  0x2c   :  { %397 = vmatmul.mubr.f32.gmra.mrb[4].mxu0 %v26_v34  ;;  %409 = vmatmul.mubr.f32.gmra.mrb[4].mxu1 %v34_v35 }
  0x2d   :  { %399 = vmatprep.mubr.f32.mxu0 %v27_v36  ;;  %411 = vmatprep.mubr.f32.mxu1 %v35_v37  ;;  %v228_v36 = vmul.f32 %v624_v41, %v205_v18  ;;  %v236_v37 = vmul.f32 %v624_v41, %v213_v19 }
  0x2f   :  { %v251_v54 = vadd.f32 %v640_v47, %v228_v36  ;;  %v259_v55 = vadd.f32 %v640_v47, %v236_v37 }
  0x30   :  { %400 = vmatmul.mubr.f32.gmra.mrb[6].mxu0 %v28_v38  ;;  %412 = vmatmul.mubr.f32.gmra.mrb[6].mxu1 %v36_v39 }
  0xf7   :  { %v392_v4 = vpop.f32.mrb[0].mxu0  ;;  %v404_v5 = vpop.f32.mrb[0].mxu1 }
  0xf8   :  { %v261_v8 = vadd.f32 %v392_v4, %v245_v56  ;;  %v269_v9 = vadd.f32 %v404_v5, %v253_v57  ;;  %v119_v10 = vpop.f32.mrb[1].mxu0  ;;  %v159_v11 = vpop.f32.mrb[1].mxu1  ;;  %v250_v57 = vadd.f32 %v640_v47, %v227_v40 }
  0xf9   :  { %v260_v14 = vadd.f32 %v244_v62, %v119_v10  ;;  %v268_v15 = vadd.f32 %v252_v63, %v159_v11 }
  0xfa   :  { %v277_v20 = vmax.f32 %v261_v8, 0.0  ;;  %v285_v21 = vmax.f32 %v269_v9, 0.0 }
  0xfb   :  { %v276_v26 = vmax.f32 %v260_v14, 0.0  ;;  %v284_v27 = vmax.f32 %v268_v15, 0.0  ;;  %v395_v28 = vpop.f32.mrb[2].mxu0  ;;  %v407_v29 = vpop.f32.mrb[2].mxu1 }
  0xfc   :  { %293 = vst [vmem:[#allocation2 + $0x8] sm:$0xff] %v277_v20  ;;  %301 = vst [vmem:[#allocation2 + $0x48] sm:$0xff] %v285_v21  ;;  %v263_v32 = vadd.f32 %v395_v28, %v247_v12  ;;  %v271_v33 = vadd.f32 %v407_v29, %v255_v13  ;;  %v129_v34 = vpop.f32.mrb[3].mxu0  ;;  %v169_v35 = vpop.f32.mrb[3].mxu1 }
  0xfd   :  { %292 = vst [vmem:[#allocation2] sm:$0xff] %v276_v26  ;;  %300 = vst [vmem:[#allocation2 + $0x40] sm:$0xff] %v284_v27  ;;  %v262_v38 = vadd.f32 %v246_v16, %v129_v34  ;;  %v270_v39 = vadd.f32 %v254_v17, %v169_v35 }
  0xfe   :  { %v279_v43 = vmax.f32 %v263_v32, 0.0  ;;  %v287_v44 = vmax.f32 %v271_v33, 0.0 }
  0xff   :  { %v278_v45 = vmax.f32 %v262_v38, 0.0  ;;  %v286_v46 = vmax.f32 %v270_v39, 0.0  ;;  %v398_v48 = vpop.f32.mrb[4].mxu0  ;;  %v410_v49 = vpop.f32.mrb[4].mxu1 }
 0x100   :  { %295 = vst [vmem:[#allocation2 + $0x18] sm:$0xff] %v279_v43  ;;  %303 = vst [vmem:[#allocation2 + $0x58] sm:$0xff] %v287_v44  ;;  %v265_v50 = vadd.f32 %v398_v48, %v249_v22  ;;  %v273_v51 = vadd.f32 %v410_v49, %v257_v23  ;;  %v139_v52 = vpop.f32.mrb[5].mxu0  ;;  %v179_v53 = vpop.f32.mrb[5].mxu1 }
 0x101   :  { %294 = vst [vmem:[#allocation2 + $0x10] sm:$0xff] %v278_v45  ;;  %302 = vst [vmem:[#allocation2 + $0x50] sm:$0xff] %v286_v46  ;;  %v264_v56 = vadd.f32 %v248_v30, %v139_v52  ;;  %v272_v41 = vadd.f32 %v256_v31, %v179_v53 }
 0x102   :  { %v281_v59 = vmax.f32 %v265_v50, 0.0  ;;  %v289_v60 = vmax.f32 %v273_v51, 0.0 }
 0x103   :  { %v280_v61 = vmax.f32 %v264_v56, 0.0  ;;  %v288_v62 = vmax.f32 %v272_v41, 0.0  ;;  %v401_v63 = vpop.f32.mrb[6].mxu0  ;;  %v413_v0 = vpop.f32.mrb[6].mxu1 }
 0x104   :  { %297 = vst [vmem:[#allocation2 + $0x28] sm:$0xff] %v281_v59  ;;  %305 = vst [vmem:[#allocation2 + $0x68] sm:$0xff] %v289_v60  ;;  %v267_v1 = vadd.f32 %v401_v63, %v251_v54  ;;  %v275_v2 = vadd.f32 %v413_v0, %v259_v55  ;;  %v149_v3 = vpop.f32.mrb[7].mxu0  ;;  %v189_v4 = vpop.f32.mrb[7].mxu1 }
 0x105   :  { %296 = vst [vmem:[#allocation2 + $0x20] sm:$0xff] %v280_v61  ;;  %304 = vst [vmem:[#allocation2 + $0x60] sm:$0xff] %v288_v62  ;;  %v266_v5 = vadd.f32 %v250_v57, %v149_v3  ;;  %v274_v6 = vadd.f32 %v258_v58, %v189_v4 }
 0x106   :  { %v283_v7 = vmax.f32 %v267_v1, 0.0  ;;  %v291_v47 = vmax.f32 %v275_v2, 0.0 }
 0x107   :  { %v282_v8 = vmax.f32 %v266_v5, 0.0  ;;  %v290_v9 = vmax.f32 %v274_v6, 0.0 }
 0x108   :  { %299 = vst [vmem:[#allocation2 + $0x38] sm:$0xff] %v283_v7  ;;  %307 = vst [vmem:[#allocation2 + $0x78] sm:$0xff] %v291_v47 }
 0x109   :  { %298 = vst [vmem:[#allocation2 + $0x30] sm:$0xff] %v282_v8  ;;  %306 = vst [vmem:[#allocation2 + $0x70] sm:$0xff] %v290_v9 }
 0x10a   :  { %476 = shalt.err (!%p473_p4)
}
 0x10b   :  { %s477_s15 = scalar_lea.hbm %s725_s5, 2048 }
 0x10c   :  { %p478_p5 = scmp.ne.s32.totalorder %s725_s5, %s477_s15  ;;  %p481_p6 = scmp.lt.u32.totalorder %s477_s15, %s725_s5 }
 0x10e   :  { %p483_p7 = pnand %p481_p6, %p478_p5 }
 0x110   :  { %486 = shalt.err (!%p483_p7)
}
 0x111   :  { %s490_s19 = smov 128   ;;  %s491_s20 = smov 8  }
 0x112   :  { %319 = dma.vmem_to_hbm [thread:$0]  %s314_s12, 2048, %s725_s5, [#allocation3], %s490_s19, %s490_s19, %s491_s20  }
 0x113   :  { %487 = dma.done.wait [#allocation3], 2048  }
 0x114   :  { %488 = vsyncadd [#allocation3], 4294965248 }
 0x115   :  { %323 = vsyncpa [#allocation3], 1 }

// kernel: conv_block_forward.4
= control target key start
LH: loop header
LB: loop body
LE: loop exit
PB: predicated region body
PF: predicated region fallthrough
CT: control target
= control target key end

     0   :  { %vm264_vm0 = vcmask 1040384   ;;  %s578_s1 = inlined_call_operand.vmem [shape: f32[128,128], index: 1, kind: input, shape index: {}]   ;;  %s579_s0 = inlined_call_operand.vmem [shape: f32[128,128], index: 0, kind: input, shape index: {}]   ;;  %s580_s2 = inlined_call_operand.vmem [shape: f32[128,128], index: 2, kind: output, shape index: {0}]   ;;  %s581_s3 = inlined_call_operand.vmem [shape: f32[1,2,128], index: 3, kind: output, shape index: {1}]  }
   0x1   :  { %v29_v0 = vld [vmem:[%s578_s1] sm:$0xff]  ;;  %v30_v1 = vld [vmem:[%s578_s1 + $0x8] sm:$0xff]  ;;  %v31_v2 = vld [vmem:[%s578_s1 + $0x10] sm:$0xff] }
   0x2   :  { %v363_v3 = vpack.c.bf16 %v30_v1, %v29_v0  ;;  %v32_v4 = vld [vmem:[%s578_s1 + $0x18] sm:$0xff]  ;;  %v33_v6 = vld [vmem:[%s578_s1 + $0x20] sm:$0xff]  ;;  %v34_v7 = vld [vmem:[%s578_s1 + $0x28] sm:$0xff] }
   0x3   :  { %v367_v5 = vpack.c.bf16 %v32_v4, %v31_v2  ;;  %v371_v8 = vpack.c.bf16 %v34_v7, %v33_v6  ;;  %v13_v9 = vld [vmem:[%s579_s0] sm:$0xff]  ;;  %v35_v10 = vld [vmem:[%s578_s1 + $0x30] sm:$0xff]  ;;  %v36_v11 = vld [vmem:[%s578_s1 + $0x38] sm:$0xff] }
   0x4   :  { %364 = vmatprep.subr.bf16.mxu0 %v363_v3  ;;  %395 = vmatprep.subr.bf16.mxu1 %v363_v3  ;;  %v21_v12 = vld [vmem:[%s579_s0 + $0x40] sm:$0xff]  ;;  %v375_v13 = vpack.c.bf16 %v36_v11, %v35_v10  ;;  %v38_v15 = vld [vmem:[%s578_s1 + $0x48] sm:$0xff]  ;;  %v39_v17 = vld [vmem:[%s578_s1 + $0x50] sm:$0xff] }
   0x5   :  { %366 = vmatpush3.bf16.msra.mxu0 %v363_v3  ;;  %403 = vmatpush3.bf16.msra.mxu1 %v363_v3  ;;  %v37_v14 = vld [vmem:[%s578_s1 + $0x40] sm:$0xff]  ;;  %v40_v18 = vld [vmem:[%s578_s1 + $0x58] sm:$0xff]  ;;  %v42_v21 = vld [vmem:[%s578_s1 + $0x68] sm:$0xff] }
   0x6   :  { %368 = vmatprep.subr.bf16.mxu0 %v367_v5  ;;  %396 = vmatprep.subr.bf16.mxu1 %v367_v5  ;;  %v379_v16 = vpack.c.bf16 %v38_v15, %v37_v14  ;;  %v383_v19 = vpack.c.bf16 %v40_v18, %v39_v17  ;;  %v41_v20 = vld [vmem:[%s578_s1 + $0x60] sm:$0xff]  ;;  %v43_v23 = vld [vmem:[%s578_s1 + $0x70] sm:$0xff]  ;;  %v44_v24 = vld [vmem:[%s578_s1 + $0x78] sm:$0xff] }
   0x7   :  { %339 = vmatprep.mubr.f32.mxu0 %v13_v9  ;;  %351 = vmatprep.mubr.f32.mxu1 %v21_v12  ;;  %v387_v22 = vpack.c.bf16 %v42_v21, %v41_v20  ;;  %v391_v25 = vpack.c.bf16 %v44_v24, %v43_v23  ;;  %v14_v26 = vld [vmem:[%s579_s0 + $0x8] sm:$0xff]  ;;  %v15_v28 = vld [vmem:[%s579_s0 + $0x10] sm:$0xff]  ;;  %v16_v30 = vld [vmem:[%s579_s0 + $0x18] sm:$0xff] }
   0x8   :  { %v22_v27 = vld [vmem:[%s579_s0 + $0x48] sm:$0xff]  ;;  %v23_v29 = vld [vmem:[%s579_s0 + $0x50] sm:$0xff]  ;;  %v24_v31 = vld [vmem:[%s579_s0 + $0x58] sm:$0xff] }
   0x9   :  { %370 = vmatpush3.bf16.msra.mxu0 %v367_v5  ;;  %404 = vmatpush3.bf16.msra.mxu1 %v367_v5  ;;  %v17_v32 = vld [vmem:[%s579_s0 + $0x20] sm:$0xff]  ;;  %v18_v34 = vld [vmem:[%s579_s0 + $0x28] sm:$0xff]  ;;  %v19_v36 = vld [vmem:[%s579_s0 + $0x30] sm:$0xff] }
   0xa   :  { %372 = vmatprep.subr.bf16.mxu0 %v371_v8  ;;  %397 = vmatprep.subr.bf16.mxu1 %v371_v8  ;;  %v25_v33 = vld [vmem:[%s579_s0 + $0x60] sm:$0xff]  ;;  %v26_v35 = vld [vmem:[%s579_s0 + $0x68] sm:$0xff]  ;;  %v27_v37 = vld [vmem:[%s579_s0 + $0x70] sm:$0xff] }
   0xb   :  { %v20_v38 = vld [vmem:[%s579_s0 + $0x38] sm:$0xff] }
   0xc   :  { %v28_v39 = vld [vmem:[%s579_s0 + $0x78] sm:$0xff] }
   0xd   :  { %374 = vmatpush3.bf16.msra.mxu0 %v371_v8  ;;  %405 = vmatpush3.bf16.msra.mxu1 %v371_v8 }
   0xe   :  { %376 = vmatprep.subr.bf16.mxu0 %v375_v13  ;;  %398 = vmatprep.subr.bf16.mxu1 %v375_v13 }
  0x11   :  { %378 = vmatpush3.bf16.msra.mxu0 %v375_v13  ;;  %406 = vmatpush3.bf16.msra.mxu1 %v375_v13 }
  0x12   :  { %380 = vmatprep.subr.bf16.mxu0 %v379_v16  ;;  %399 = vmatprep.subr.bf16.mxu1 %v379_v16 }
  0x15   :  { %382 = vmatpush3.bf16.msra.mxu0 %v379_v16  ;;  %407 = vmatpush3.bf16.msra.mxu1 %v379_v16 }
  0x16   :  { %384 = vmatprep.subr.bf16.mxu0 %v383_v19  ;;  %400 = vmatprep.subr.bf16.mxu1 %v383_v19 }
  0x19   :  { %386 = vmatpush3.bf16.msra.mxu0 %v383_v19  ;;  %408 = vmatpush3.bf16.msra.mxu1 %v383_v19 }
  0x1a   :  { %388 = vmatprep.subr.bf16.mxu0 %v387_v22  ;;  %401 = vmatprep.subr.bf16.mxu1 %v387_v22 }
  0x1d   :  { %390 = vmatpush3.bf16.msra.mxu0 %v387_v22  ;;  %409 = vmatpush3.bf16.msra.mxu1 %v387_v22 }
  0x1e   :  { %392 = vmatprep.subr.bf16.mxu0 %v391_v25  ;;  %402 = vmatprep.subr.bf16.mxu1 %v391_v25 }
  0x21   :  { %394 = vmatpush3.bf16.msra.mxu0 %v391_v25  ;;  %410 = vmatpush3.bf16.msra.mxu1 %v391_v25 }
  0x24   :  { %340 = vmatmul.mubr.f32.vlgmr.msra.gmra.mrb[0].mxu0 %v14_v26  ;;  %352 = vmatmul.mubr.f32.vlgmr.msra.gmra.mrb[0].mxu1 %v22_v27 }
  0x25   :  { %342 = vmatprep.mubr.f32.mxu0 %v15_v28  ;;  %354 = vmatprep.mubr.f32.mxu1 %v23_v29 }
  0x28   :  { %343 = vmatmul.mubr.f32.gmra.mrb[2].mxu0 %v16_v30  ;;  %355 = vmatmul.mubr.f32.gmra.mrb[2].mxu1 %v24_v31 }
  0x29   :  { %345 = vmatprep.mubr.f32.mxu0 %v17_v32  ;;  %357 = vmatprep.mubr.f32.mxu1 %v25_v33 }
  0x2c   :  { %346 = vmatmul.mubr.f32.gmra.mrb[4].mxu0 %v18_v34  ;;  %358 = vmatmul.mubr.f32.gmra.mrb[4].mxu1 %v26_v35 }
  0x2d   :  { %348 = vmatprep.mubr.f32.mxu0 %v19_v36  ;;  %360 = vmatprep.mubr.f32.mxu1 %v27_v37 }
  0x30   :  { %349 = vmatmul.mubr.f32.gmra.mrb[6].mxu0 %v20_v38  ;;  %361 = vmatmul.mubr.f32.gmra.mrb[6].mxu1 %v28_v39 }
  0xf7   :  { %v341_v40 = vpop.f32.mrb[0].mxu0  ;;  %v353_v41 = vpop.f32.mrb[0].mxu1 }
  0xf8   :  { %191 = vst [vmem:[%s580_s2 + $0x8] sm:$0xff] %v341_v40  ;;  %v228_v42 = vmul.f32 %v341_v40, %v341_v40  ;;  %v111_v43 = vpop.f32.mrb[1].mxu0  ;;  %199 = vst [vmem:[%s580_s2 + $0x48] sm:$0xff] %v353_v41  ;;  %v151_v44 = vpop.f32.mrb[1].mxu1  ;;  %v236_v16 = vmul.f32 %v353_v41, %v353_v41 }
  0xf9   :  { %190 = vst [vmem:[%s580_s2] sm:$0xff] %v111_v43  ;;  %v206_v45 = vadd.f32 %v341_v40, %v111_v43  ;;  %v227_v46 = vmul.f32 %v111_v43, %v111_v43  ;;  %198 = vst [vmem:[%s580_s2 + $0x40] sm:$0xff] %v151_v44  ;;  %v235_v13 = vmul.f32 %v151_v44, %v151_v44 }
  0xfb   :  { %v243_v47 = vadd.f32 %v228_v42, %v227_v46  ;;  %v344_v48 = vpop.f32.mrb[2].mxu0  ;;  %v356_v49 = vpop.f32.mrb[2].mxu1 }
  0xfc   :  { %193 = vst [vmem:[%s580_s2 + $0x18] sm:$0xff] %v344_v48  ;;  %v121_v50 = vpop.f32.mrb[3].mxu0  ;;  %201 = vst [vmem:[%s580_s2 + $0x58] sm:$0xff] %v356_v49  ;;  %v161_v51 = vpop.f32.mrb[3].mxu1  ;;  %v230_v54 = vmul.f32 %v344_v48, %v344_v48  ;;  %v238_v22 = vmul.f32 %v356_v49, %v356_v49 }
  0xfd   :  { %192 = vst [vmem:[%s580_s2 + $0x10] sm:$0xff] %v121_v50  ;;  %v207_v52 = vadd.f32 %v206_v45, %v121_v50  ;;  %v229_v53 = vmul.f32 %v121_v50, %v121_v50  ;;  %200 = vst [vmem:[%s580_s2 + $0x50] sm:$0xff] %v161_v51  ;;  %v237_v19 = vmul.f32 %v161_v51, %v161_v51 }
  0xff   :  { %v244_v55 = vadd.f32 %v243_v47, %v229_v53  ;;  %v347_v56 = vpop.f32.mrb[4].mxu0  ;;  %v208_v57 = vadd.f32 %v344_v48, %v207_v52  ;;  %v359_v58 = vpop.f32.mrb[4].mxu1 }
 0x100   :  { %195 = vst [vmem:[%s580_s2 + $0x28] sm:$0xff] %v347_v56  ;;  %v131_v59 = vpop.f32.mrb[5].mxu0  ;;  %203 = vst [vmem:[%s580_s2 + $0x68] sm:$0xff] %v359_v58  ;;  %v171_v60 = vpop.f32.mrb[5].mxu1  ;;  %v232_v0 = vmul.f32 %v347_v56, %v347_v56  ;;  %v240_v28 = vmul.f32 %v359_v58, %v359_v58 }
 0x101   :  { %194 = vst [vmem:[%s580_s2 + $0x20] sm:$0xff] %v131_v59  ;;  %v209_v61 = vadd.f32 %v208_v57, %v131_v59  ;;  %v231_v62 = vmul.f32 %v131_v59, %v131_v59  ;;  %v245_v63 = vadd.f32 %v244_v55, %v230_v54  ;;  %202 = vst [vmem:[%s580_s2 + $0x60] sm:$0xff] %v171_v60 }
 0x102   :  { %v239_v25 = vmul.f32 %v171_v60, %v171_v60 }
 0x103   :  { %v246_v1 = vadd.f32 %v245_v63, %v231_v62  ;;  %v350_v2 = vpop.f32.mrb[6].mxu0  ;;  %v210_v3 = vadd.f32 %v347_v56, %v209_v61  ;;  %v362_v4 = vpop.f32.mrb[6].mxu1 }
 0x104   :  { %197 = vst [vmem:[%s580_s2 + $0x38] sm:$0xff] %v350_v2  ;;  %v141_v5 = vpop.f32.mrb[7].mxu0  ;;  %205 = vst [vmem:[%s580_s2 + $0x78] sm:$0xff] %v362_v4  ;;  %v181_v6 = vpop.f32.mrb[7].mxu1  ;;  %v234_v10 = vmul.f32 %v350_v2, %v350_v2  ;;  %v242_v34 = vmul.f32 %v362_v4, %v362_v4 }
 0x105   :  { %196 = vst [vmem:[%s580_s2 + $0x30] sm:$0xff] %v141_v5  ;;  %v211_v7 = vadd.f32 %v210_v3, %v141_v5  ;;  %v233_v8 = vmul.f32 %v141_v5, %v141_v5  ;;  %v247_v9 = vadd.f32 %v246_v1, %v232_v0  ;;  %204 = vst [vmem:[%s580_s2 + $0x70] sm:$0xff] %v181_v6 }
 0x106   :  { %v241_v31 = vmul.f32 %v181_v6, %v181_v6 }
 0x107   :  { %v212_v11 = vadd.f32 %v350_v2, %v211_v7  ;;  %v248_v12 = vadd.f32 %v247_v9, %v233_v8 }
 0x109   :  { %v249_v14 = vadd.f32 %v248_v12, %v234_v10  ;;  %v213_v15 = vadd.f32 %v212_v11, %v151_v44 }
 0x10b   :  { %v250_v17 = vadd.f32 %v249_v14, %v235_v13  ;;  %v214_v18 = vadd.f32 %v353_v41, %v213_v15 }
 0x10d   :  { %v215_v20 = vadd.f32 %v214_v18, %v161_v51  ;;  %v251_v21 = vadd.f32 %v250_v17, %v236_v16 }
 0x10f   :  { %v252_v23 = vadd.f32 %v251_v21, %v237_v19  ;;  %v216_v24 = vadd.f32 %v356_v49, %v215_v20 }
 0x111   :  { %v217_v26 = vadd.f32 %v216_v24, %v171_v60  ;;  %v253_v27 = vadd.f32 %v252_v23, %v238_v22 }
 0x113   :  { %v254_v29 = vadd.f32 %v253_v27, %v239_v25  ;;  %v218_v30 = vadd.f32 %v359_v58, %v217_v26 }
 0x115   :  { %v219_v32 = vadd.f32 %v218_v30, %v181_v6  ;;  %v255_v33 = vadd.f32 %v254_v29, %v240_v28 }
 0x117   :  { %v220_v35 = vadd.f32 %v362_v4, %v219_v32  ;;  %v256_v36 = vadd.f32 %v255_v33, %v241_v31 }
 0x119   :  { %v221_v37 = vrot.slane %v220_v35, 4  ;;  %v257_v38 = vadd.f32 %v256_v36, %v242_v34 }
 0x11b   :  { %v222_v39 = vadd.f32 %v221_v37, %v220_v35  ;;  %v258_v40 = vrot.slane %v257_v38, 4 }
 0x11d   :  { %v223_v41 = vrot.slane %v222_v39, 2  ;;  %v259_v42 = vadd.f32 %v258_v40, %v257_v38 }
 0x11f   :  { %v224_v43 = vadd.f32 %v223_v41, %v222_v39  ;;  %v260_v44 = vrot.slane %v259_v42, 2 }
 0x121   :  { %v225_v45 = vrot.slane %v224_v43, 1  ;;  %v261_v46 = vadd.f32 %v260_v44, %v259_v42 }
 0x123   :  { %v262_v47 = vrot.slane %v261_v46, 1  ;;  %v226_v48 = vadd.f32 %v225_v45, %v224_v43 }
 0x125   :  { %v263_v49 = vadd.f32 %v262_v47, %v261_v46 }
 0x127   :  { %v265_v50 = vsel %vm264_vm0, %v226_v48, %v263_v49 }
 0x128   :  { %266 = vst [vmem:[%s581_s3] sm:$0x3] %v265_v50 }

// kernel: conv_block_forward.6
= control target key start
LH: loop header
LB: loop body
LE: loop exit
PB: predicated region body
PF: predicated region fallthrough
CT: control target
= control target key end

     0   :  { %vm332_vm0 = vcmask 1040384   ;;  %s700_s1 = inlined_call_operand.vmem [shape: f32[128,128], index: 1, kind: input, shape index: {}]   ;;  %s701_s0 = inlined_call_operand.vmem [shape: f32[128,128], index: 0, kind: input, shape index: {}]   ;;  %s702_s2 = inlined_call_operand.vmem [shape: f32[1,128], index: 2, kind: input, shape index: {}]   ;;  %s703_s3 = inlined_call_operand.vmem [shape: f32[1,128], index: 3, kind: input, shape index: {}]   ;;  %s704_s4 = inlined_call_operand.vmem [shape: f32[128,128], index: 4, kind: output, shape index: {0}]   ;;  %s705_s5 = inlined_call_operand.vmem [shape: f32[1,2,128], index: 5, kind: output, shape index: {1}]  }
   0x1   :  { %v97_v0 = vld [vmem:[%s700_s1] sm:$0xff]  ;;  %v98_v1 = vld [vmem:[%s700_s1 + $0x8] sm:$0xff]  ;;  %v99_v2 = vld [vmem:[%s700_s1 + $0x10] sm:$0xff] }
   0x2   :  { %v433_v3 = vpack.c.bf16 %v98_v1, %v97_v0  ;;  %v100_v4 = vld [vmem:[%s700_s1 + $0x18] sm:$0xff]  ;;  %v101_v6 = vld [vmem:[%s700_s1 + $0x20] sm:$0xff]  ;;  %v102_v7 = vld [vmem:[%s700_s1 + $0x28] sm:$0xff] }
   0x3   :  { %v437_v5 = vpack.c.bf16 %v100_v4, %v99_v2  ;;  %v441_v8 = vpack.c.bf16 %v102_v7, %v101_v6  ;;  %v19_v9 = vld [vmem:[%s701_s0] sm:$0xff]  ;;  %v103_v11 = vld [vmem:[%s700_s1 + $0x30] sm:$0xff]  ;;  %v104_v12 = vld [vmem:[%s700_s1 + $0x38] sm:$0xff] }
   0x4   :  { %434 = vmatprep.subr.bf16.mxu0 %v433_v3  ;;  %465 = vmatprep.subr.bf16.mxu1 %v433_v3  ;;  %v535_v10 = vld [vmem:[%s702_s2] ss:$0 sm:$0xff]  ;;  %v445_v16 = vpack.c.bf16 %v104_v12, %v103_v11  ;;  %v106_v19 = vld [vmem:[%s700_s1 + $0x48] sm:$0xff]  ;;  %v107_v23 = vld [vmem:[%s700_s1 + $0x50] sm:$0xff] }
   0x5   :  { %436 = vmatpush3.bf16.msra.mxu0 %v433_v3  ;;  %473 = vmatpush3.bf16.msra.mxu1 %v433_v3  ;;  %v42_v13 = vmul.f32 %v535_v10, %v19_v9  ;;  %v547_v14 = vld [vmem:[%s703_s3] ss:$0 sm:$0xff]  ;;  %v108_v24 = vld [vmem:[%s700_s1 + $0x58] sm:$0xff]  ;;  %v110_v29 = vld [vmem:[%s700_s1 + $0x68] sm:$0xff] }
   0x6   :  { %438 = vmatprep.subr.bf16.mxu0 %v437_v5  ;;  %466 = vmatprep.subr.bf16.mxu1 %v437_v5  ;;  %v27_v17 = vld [vmem:[%s701_s0 + $0x40] sm:$0xff]  ;;  %v453_v27 = vpack.c.bf16 %v108_v24, %v107_v23  ;;  %v20_v30 = vld [vmem:[%s701_s0 + $0x8] sm:$0xff]  ;;  %v21_v33 = vld [vmem:[%s701_s0 + $0x10] sm:$0xff] }
   0x7   :  { %v65_v15 = vadd.f32 %v547_v14, %v42_v13  ;;  %v105_v18 = vld [vmem:[%s700_s1 + $0x40] sm:$0xff]  ;;  %v50_v21 = vmul.f32 %v535_v10, %v27_v17  ;;  %v28_v31 = vld [vmem:[%s701_s0 + $0x48] sm:$0xff]  ;;  %v29_v34 = vld [vmem:[%s701_s0 + $0x50] sm:$0xff]  ;;  %v43_v37 = vmul.f32 %v535_v10, %v20_v30  ;;  %v44_v41 = vmul.f32 %v535_v10, %v21_v33 }
   0x8   :  { %v449_v22 = vpack.c.bf16 %v106_v19, %v105_v18  ;;  %v109_v28 = vld [vmem:[%s700_s1 + $0x60] sm:$0xff]  ;;  %v111_v35 = vld [vmem:[%s700_s1 + $0x70] sm:$0xff]  ;;  %v112_v36 = vld [vmem:[%s700_s1 + $0x78] sm:$0xff]  ;;  %v51_v40 = vmul.f32 %v535_v10, %v28_v31  ;;  %v52_v42 = vmul.f32 %v535_v10, %v29_v34 }
   0x9   :  { %440 = vmatpush3.bf16.msra.mxu0 %v437_v5  ;;  %474 = vmatpush3.bf16.msra.mxu1 %v437_v5  ;;  %v81_v20 = vmax.f32 %v65_v15, 0.0  ;;  %v73_v25 = vadd.f32 %v547_v14, %v50_v21  ;;  %v457_v32 = vpack.c.bf16 %v110_v29, %v109_v28  ;;  %v22_v38 = vld [vmem:[%s701_s0 + $0x18] sm:$0xff]  ;;  %v23_v39 = vld [vmem:[%s701_s0 + $0x20] sm:$0xff]  ;;  %v461_v44 = vpack.c.bf16 %v112_v36, %v111_v35  ;;  %v24_v49 = vld [vmem:[%s701_s0 + $0x28] sm:$0xff] }
   0xa   :  { %442 = vmatprep.subr.bf16.mxu0 %v441_v8  ;;  %467 = vmatprep.subr.bf16.mxu1 %v441_v8  ;;  %v30_v43 = vld [vmem:[%s701_s0 + $0x58] sm:$0xff]  ;;  %v31_v45 = vld [vmem:[%s701_s0 + $0x60] sm:$0xff]  ;;  %v45_v46 = vmul.f32 %v535_v10, %v22_v38  ;;  %v46_v47 = vmul.f32 %v535_v10, %v23_v39  ;;  %v66_v48 = vadd.f32 %v547_v14, %v43_v37  ;;  %v25_v50 = vld [vmem:[%s701_s0 + $0x30] sm:$0xff] }
   0xb   :  { %409 = vmatprep.mubr.f32.mxu0 %v81_v20  ;;  %v89_v26 = vmax.f32 %v73_v25, 0.0  ;;  %v74_v51 = vadd.f32 %v547_v14, %v51_v40  ;;  %v53_v52 = vmul.f32 %v535_v10, %v30_v43  ;;  %v67_v53 = vadd.f32 %v547_v14, %v44_v41  ;;  %v32_v56 = vld [vmem:[%s701_s0 + $0x68] sm:$0xff]  ;;  %v33_v57 = vld [vmem:[%s701_s0 + $0x70] sm:$0xff]  ;;  %v26_v63 = vld [vmem:[%s701_s0 + $0x38] sm:$0xff] }
   0xc   :  { %v75_v54 = vadd.f32 %v547_v14, %v52_v42  ;;  %v54_v55 = vmul.f32 %v535_v10, %v31_v45  ;;  %v68_v58 = vadd.f32 %v547_v14, %v45_v46  ;;  %v69_v59 = vadd.f32 %v547_v14, %v46_v47  ;;  %v34_v7 = vld [vmem:[%s701_s0 + $0x78] sm:$0xff] }
   0xd   :  { %444 = vmatpush3.bf16.msra.mxu0 %v441_v8  ;;  %475 = vmatpush3.bf16.msra.mxu1 %v441_v8  ;;  %v47_v60 = vmul.f32 %v535_v10, %v24_v49  ;;  %v48_v61 = vmul.f32 %v535_v10, %v25_v50  ;;  %v82_v62 = vmax.f32 %v66_v48, 0.0  ;;  %v90_v0 = vmax.f32 %v74_v51, 0.0 }
   0xe   :  { %446 = vmatprep.subr.bf16.mxu0 %v445_v16  ;;  %468 = vmatprep.subr.bf16.mxu1 %v445_v16  ;;  %v76_v1 = vadd.f32 %v547_v14, %v53_v52  ;;  %v55_v2 = vmul.f32 %v535_v10, %v32_v56  ;;  %v83_v3 = vmax.f32 %v67_v53, 0.0  ;;  %v91_v4 = vmax.f32 %v75_v54, 0.0 }
   0xf   :  { %421 = vmatprep.mubr.f32.mxu1 %v89_v26  ;;  %v77_v5 = vadd.f32 %v547_v14, %v54_v55  ;;  %v56_v6 = vmul.f32 %v535_v10, %v33_v57  ;;  %v70_v8 = vadd.f32 %v547_v14, %v47_v60  ;;  %v49_v9 = vmul.f32 %v535_v10, %v26_v63 }
  0x10   :  { %v84_v11 = vmax.f32 %v68_v58, 0.0  ;;  %v92_v12 = vmax.f32 %v76_v1, 0.0  ;;  %v78_v13 = vadd.f32 %v547_v14, %v55_v2  ;;  %v57_v15 = vmul.f32 %v535_v10, %v34_v7 }
  0x11   :  { %448 = vmatpush3.bf16.msra.mxu0 %v445_v16  ;;  %476 = vmatpush3.bf16.msra.mxu1 %v445_v16  ;;  %v85_v16 = vmax.f32 %v69_v59, 0.0  ;;  %v71_v17 = vadd.f32 %v547_v14, %v48_v61  ;;  %v93_v18 = vmax.f32 %v77_v5, 0.0  ;;  %v79_v19 = vadd.f32 %v547_v14, %v56_v6 }
  0x12   :  { %450 = vmatprep.subr.bf16.mxu0 %v449_v22  ;;  %469 = vmatprep.subr.bf16.mxu1 %v449_v22  ;;  %v86_v20 = vmax.f32 %v70_v8, 0.0  ;;  %v72_v21 = vadd.f32 %v547_v14, %v49_v9  ;;  %v80_v23 = vadd.f32 %v547_v14, %v57_v15 }
  0x13   :  { %v87_v24 = vmax.f32 %v71_v17, 0.0  ;;  %v95_v10 = vmax.f32 %v79_v19, 0.0 }
  0x14   :  { %v88_v25 = vmax.f32 %v72_v21, 0.0  ;;  %v96_v26 = vmax.f32 %v80_v23, 0.0 }
  0x15   :  { %452 = vmatpush3.bf16.msra.mxu0 %v449_v22  ;;  %477 = vmatpush3.bf16.msra.mxu1 %v449_v22  ;;  %v94_v22 = vmax.f32 %v78_v13, 0.0 }
  0x16   :  { %454 = vmatprep.subr.bf16.mxu0 %v453_v27  ;;  %470 = vmatprep.subr.bf16.mxu1 %v453_v27 }
  0x19   :  { %456 = vmatpush3.bf16.msra.mxu0 %v453_v27  ;;  %478 = vmatpush3.bf16.msra.mxu1 %v453_v27 }
  0x1a   :  { %458 = vmatprep.subr.bf16.mxu0 %v457_v32  ;;  %471 = vmatprep.subr.bf16.mxu1 %v457_v32 }
  0x1d   :  { %460 = vmatpush3.bf16.msra.mxu0 %v457_v32  ;;  %479 = vmatpush3.bf16.msra.mxu1 %v457_v32 }
  0x1e   :  { %462 = vmatprep.subr.bf16.mxu0 %v461_v44  ;;  %472 = vmatprep.subr.bf16.mxu1 %v461_v44 }
  0x21   :  { %464 = vmatpush3.bf16.msra.mxu0 %v461_v44  ;;  %480 = vmatpush3.bf16.msra.mxu1 %v461_v44 }
  0x24   :  { %410 = vmatmul.mubr.f32.vlgmr.msra.gmra.mrb[0].mxu0 %v82_v62  ;;  %422 = vmatmul.mubr.f32.vlgmr.msra.gmra.mrb[0].mxu1 %v90_v0 }
  0x25   :  { %412 = vmatprep.mubr.f32.mxu0 %v83_v3  ;;  %424 = vmatprep.mubr.f32.mxu1 %v91_v4 }
  0x28   :  { %413 = vmatmul.mubr.f32.gmra.mrb[2].mxu0 %v84_v11  ;;  %425 = vmatmul.mubr.f32.gmra.mrb[2].mxu1 %v92_v12 }
  0x29   :  { %415 = vmatprep.mubr.f32.mxu0 %v85_v16  ;;  %427 = vmatprep.mubr.f32.mxu1 %v93_v18 }
  0x2c   :  { %416 = vmatmul.mubr.f32.gmra.mrb[4].mxu0 %v86_v20  ;;  %428 = vmatmul.mubr.f32.gmra.mrb[4].mxu1 %v94_v22 }
  0x2d   :  { %418 = vmatprep.mubr.f32.mxu0 %v87_v24  ;;  %430 = vmatprep.mubr.f32.mxu1 %v95_v10 }
  0x30   :  { %419 = vmatmul.mubr.f32.gmra.mrb[6].mxu0 %v88_v25  ;;  %431 = vmatmul.mubr.f32.gmra.mrb[6].mxu1 %v96_v26 }
  0xf7   :  { %v411_v27 = vpop.f32.mrb[0].mxu0  ;;  %v423_v28 = vpop.f32.mrb[0].mxu1 }
  0xf8   :  { %259 = vst [vmem:[%s704_s4 + $0x8] sm:$0xff] %v411_v27  ;;  %v296_v29 = vmul.f32 %v411_v27, %v411_v27  ;;  %v179_v14 = vpop.f32.mrb[1].mxu0  ;;  %267 = vst [vmem:[%s704_s4 + $0x48] sm:$0xff] %v423_v28  ;;  %v219_v30 = vpop.f32.mrb[1].mxu1  ;;  %v304_v2 = vmul.f32 %v423_v28, %v423_v28 }
  0xf9   :  { %258 = vst [vmem:[%s704_s4] sm:$0xff] %v179_v14  ;;  %v274_v31 = vadd.f32 %v411_v27, %v179_v14  ;;  %v295_v32 = vmul.f32 %v179_v14, %v179_v14  ;;  %266 = vst [vmem:[%s704_s4 + $0x40] sm:$0xff] %v219_v30  ;;  %v303_v63 = vmul.f32 %v219_v30, %v219_v30 }
  0xfb   :  { %v311_v33 = vadd.f32 %v296_v29, %v295_v32  ;;  %v414_v34 = vpop.f32.mrb[2].mxu0  ;;  %v426_v35 = vpop.f32.mrb[2].mxu1 }
  0xfc   :  { %261 = vst [vmem:[%s704_s4 + $0x18] sm:$0xff] %v414_v34  ;;  %v189_v36 = vpop.f32.mrb[3].mxu0  ;;  %269 = vst [vmem:[%s704_s4 + $0x58] sm:$0xff] %v426_v35  ;;  %v229_v37 = vpop.f32.mrb[3].mxu1  ;;  %v298_v40 = vmul.f32 %v414_v34, %v414_v34  ;;  %v306_v8 = vmul.f32 %v426_v35, %v426_v35 }
  0xfd   :  { %260 = vst [vmem:[%s704_s4 + $0x10] sm:$0xff] %v189_v36  ;;  %v275_v38 = vadd.f32 %v274_v31, %v189_v36  ;;  %v297_v39 = vmul.f32 %v189_v36, %v189_v36  ;;  %268 = vst [vmem:[%s704_s4 + $0x50] sm:$0xff] %v229_v37  ;;  %v305_v5 = vmul.f32 %v229_v37, %v229_v37 }
  0xff   :  { %v312_v41 = vadd.f32 %v311_v33, %v297_v39  ;;  %v417_v42 = vpop.f32.mrb[4].mxu0  ;;  %v276_v43 = vadd.f32 %v414_v34, %v275_v38  ;;  %v429_v44 = vpop.f32.mrb[4].mxu1 }
 0x100   :  { %263 = vst [vmem:[%s704_s4 + $0x28] sm:$0xff] %v417_v42  ;;  %v199_v45 = vpop.f32.mrb[5].mxu0  ;;  %271 = vst [vmem:[%s704_s4 + $0x68] sm:$0xff] %v429_v44  ;;  %v239_v46 = vpop.f32.mrb[5].mxu1  ;;  %v300_v50 = vmul.f32 %v417_v42, %v417_v42  ;;  %v308_v16 = vmul.f32 %v429_v44, %v429_v44 }
 0x101   :  { %262 = vst [vmem:[%s704_s4 + $0x20] sm:$0xff] %v199_v45  ;;  %v277_v47 = vadd.f32 %v276_v43, %v199_v45  ;;  %v299_v48 = vmul.f32 %v199_v45, %v199_v45  ;;  %v313_v49 = vadd.f32 %v312_v41, %v298_v40  ;;  %270 = vst [vmem:[%s704_s4 + $0x60] sm:$0xff] %v239_v46 }
 0x102   :  { %v307_v12 = vmul.f32 %v239_v46, %v239_v46 }
 0x103   :  { %v314_v51 = vadd.f32 %v313_v49, %v299_v48  ;;  %v420_v52 = vpop.f32.mrb[6].mxu0  ;;  %v278_v53 = vadd.f32 %v417_v42, %v277_v47  ;;  %v432_v54 = vpop.f32.mrb[6].mxu1 }
 0x104   :  { %265 = vst [vmem:[%s704_s4 + $0x38] sm:$0xff] %v420_v52  ;;  %v209_v55 = vpop.f32.mrb[7].mxu0  ;;  %273 = vst [vmem:[%s704_s4 + $0x78] sm:$0xff] %v432_v54  ;;  %v249_v56 = vpop.f32.mrb[7].mxu1  ;;  %v302_v60 = vmul.f32 %v420_v52, %v420_v52  ;;  %v310_v22 = vmul.f32 %v432_v54, %v432_v54 }
 0x105   :  { %264 = vst [vmem:[%s704_s4 + $0x30] sm:$0xff] %v209_v55  ;;  %v279_v57 = vadd.f32 %v278_v53, %v209_v55  ;;  %v301_v58 = vmul.f32 %v209_v55, %v209_v55  ;;  %v315_v59 = vadd.f32 %v314_v51, %v300_v50  ;;  %272 = vst [vmem:[%s704_s4 + $0x70] sm:$0xff] %v249_v56 }
 0x106   :  { %v309_v19 = vmul.f32 %v249_v56, %v249_v56 }
 0x107   :  { %v280_v61 = vadd.f32 %v420_v52, %v279_v57  ;;  %v316_v62 = vadd.f32 %v315_v59, %v301_v58 }
 0x109   :  { %v317_v0 = vadd.f32 %v316_v62, %v302_v60  ;;  %v281_v1 = vadd.f32 %v280_v61, %v219_v30 }
 0x10b   :  { %v318_v3 = vadd.f32 %v317_v0, %v303_v63  ;;  %v282_v4 = vadd.f32 %v423_v28, %v281_v1 }
 0x10d   :  { %v283_v6 = vadd.f32 %v282_v4, %v229_v37  ;;  %v319_v7 = vadd.f32 %v318_v3, %v304_v2 }
 0x10f   :  { %v320_v9 = vadd.f32 %v319_v7, %v305_v5  ;;  %v284_v11 = vadd.f32 %v426_v35, %v283_v6 }
 0x111   :  { %v285_v13 = vadd.f32 %v284_v11, %v239_v46  ;;  %v321_v15 = vadd.f32 %v320_v9, %v306_v8 }
 0x113   :  { %v322_v17 = vadd.f32 %v321_v15, %v307_v12  ;;  %v286_v18 = vadd.f32 %v429_v44, %v285_v13 }
 0x115   :  { %v287_v20 = vadd.f32 %v286_v18, %v249_v56  ;;  %v323_v21 = vadd.f32 %v322_v17, %v308_v16 }
 0x117   :  { %v288_v23 = vadd.f32 %v432_v54, %v287_v20  ;;  %v324_v24 = vadd.f32 %v323_v21, %v309_v19 }
 0x119   :  { %v289_v10 = vrot.slane %v288_v23, 4  ;;  %v325_v25 = vadd.f32 %v324_v24, %v310_v22 }
 0x11b   :  { %v290_v26 = vadd.f32 %v289_v10, %v288_v23  ;;  %v326_v27 = vrot.slane %v325_v25, 4 }
 0x11d   :  { %v291_v28 = vrot.slane %v290_v26, 2  ;;  %v327_v29 = vadd.f32 %v326_v27, %v325_v25 }
 0x11f   :  { %v292_v14 = vadd.f32 %v291_v28, %v290_v26  ;;  %v328_v30 = vrot.slane %v327_v29, 2 }
 0x121   :  { %v293_v31 = vrot.slane %v292_v14, 1  ;;  %v329_v32 = vadd.f32 %v328_v30, %v327_v29 }
 0x123   :  { %v330_v33 = vrot.slane %v329_v32, 1  ;;  %v294_v34 = vadd.f32 %v293_v31, %v292_v14 }
 0x125   :  { %v331_v35 = vadd.f32 %v330_v33, %v329_v32 }
 0x127   :  { %v333_v36 = vsel %vm332_vm0, %v294_v34, %v331_v35 }
 0x128   :  { %334 = vst [vmem:[%s705_s5] sm:$0x3] %v333_v36 }

// kernel: conv_block_forward.5
= control target key start
LH: loop header
LB: loop body
LE: loop exit
PB: predicated region body
PF: predicated region fallthrough
CT: control target
= control target key end

     0   :  { %s3152_s18 = smov 0   ;;  %s3154_s19 = smov 0   ;;  %s3901_s0 = inlined_call_operand.vmem [shape: f32[2,10,10,128], index: 0, kind: input, shape index: {}]   ;;  %s3902_s1 = inlined_call_operand.vmem [shape: f32[9,128,128], index: 1, kind: input, shape index: {}]   ;;  %s3903_s2 = inlined_call_operand.vmem [shape: f32[1,128], index: 2, kind: input, shape index: {}]   ;;  %s3904_s3 = inlined_call_operand.vmem [shape: f32[1,128], index: 3, kind: input, shape index: {}]   ;;  %s3905_s4 = inlined_call_operand.vmem [shape: f32[2,8,8,128], index: 4, kind: output, shape index: {0}]   ;;  %s3906_s5 = inlined_call_operand.vmem [shape: f32[2,1,2,128], index: 5, kind: output, shape index: {1}]  }
   0x1   :  { %s3156_s20 = smov 0  }
   0x2 LB: > { %s28_s21 = sadd.s32 1, %s3115_s19  ;;  %p1931_p0 = scmp.ge.s32.totalorder %s3119_s20, 1  ;;  %s3119_s20 = sphi %s3156_s20, %s16_s20   ;;  %s3115_s19 = sphi %s3154_s19, %s3908_s19   ;;  %s3111_s18 = sphi %s3152_s18, %s3907_s18  }
   0x3   : > { %p30_p1 = scmp.ge.s32.totalorder %s28_s21, 2  ;;  %p206_p2 = scmp.lt.s32.totalorder %s3119_s20, 3 }
   0x5   : > { %s3910_s21 = smov (%p30_p1, %s28_s21), 0  ;;  %p207_p3 = pnand %p1931_p0, %p206_p2 }
   0x6   : > { %v1938_v0 = vld [vmem:[%s3902_s1 + $0x80] sm:$0xff] (!%p207_p3)  ;;  %v1939_v1 = vld [vmem:[%s3902_s1 + $0x88] sm:$0xff] (!%p207_p3)  ;;  %p245_p4 = scmp.lt.s32.totalorder (!%p207_p3), %s3111_s18, 1  ;;  %v1940_v5 = vld [vmem:[%s3902_s1 + $0x90] sm:$0xff] (!%p207_p3)  ;;  %v3121_v7 = vmov (!%p207_p3), 0.0   ;;  %v374_v17 = vlaneseq (!%p207_p3)  ;;  %vm1800_vm2 = vcmask (!%p207_p3), 1040384  }
   0x7   : > { %210 = sbr.rel (%p207_p3) target bundleno = 417 (0x1a1), region = 36  ;;  %v1986_v2 = vld [vmem:[%s3902_s1 + $0x200] sm:$0xff] (!%p207_p3)  ;;  %v2681_v3 = vpack.c.bf16 (!%p207_p3), %v1939_v1, %v1938_v0  ;;  %v1987_v4 = vld [vmem:[%s3902_s1 + $0x208] sm:$0xff] (!%p207_p3)  ;;  %v1941_v6 = vld [vmem:[%s3902_s1 + $0x98] sm:$0xff] (!%p207_p3)  ;;  %511 = vst [vmem:[#allocation2] sm:$0xff] (!%p207_p3), %v3121_v7 }
   0x8   : > { %512 = vst [vmem:[#allocation2 + $0x8] sm:$0x3] (!%p207_p3), %v3121_v7  ;;  %529 = vst [vmem:[#allocation2 + $0x90] sm:$0xff] (!%p207_p3), %v3121_v7  ;;  %v2809_v8 = vpack.c.bf16 (!%p207_p3), %v1987_v4, %v1986_v2  ;;  %v2685_v9 = vpack.c.bf16 (!%p207_p3), %v1941_v6, %v1940_v5  ;;  %v1988_v10 = vld [vmem:[%s3902_s1 + $0x210] sm:$0xff] (!%p207_p3)  ;;  %v1989_v11 = vld [vmem:[%s3902_s1 + $0x218] sm:$0xff] (!%p207_p3)  ;;  %v3226_v24 = vshrl.u32 (!%p207_p3), %v374_v17, 7 }
   0x9   : > { %530 = vst [vmem:[#allocation2 + $0x98] sm:$0x3] (!%p207_p3), %v3121_v7  ;;  %v1942_v12 = vld [vmem:[%s3902_s1 + $0xa0] sm:$0xff] (!%p207_p3)  ;;  %2682 = vmatprep.subr.bf16.mxu1 (!%p207_p3), %v2681_v3  ;;  %v2813_v13 = vpack.c.bf16 (!%p207_p3), %v1989_v11, %v1988_v10  ;;  %v1943_v14 = vld [vmem:[%s3902_s1 + $0xa8] sm:$0xff] (!%p207_p3)  ;;  %v1944_v20 = vld [vmem:[%s3902_s1 + $0xb0] sm:$0xff] (!%p207_p3) }
   0xa   : > { %v1990_v15 = vld [vmem:[%s3902_s1 + $0x220] sm:$0xff] (!%p207_p3)  ;;  %v1991_v16 = vld [vmem:[%s3902_s1 + $0x228] sm:$0xff] (!%p207_p3)  ;;  %2810 = vmatprep.subr.bf16.mxu0 (!%p207_p3), %v2809_v8  ;;  %2684 = vmatpush3.bf16.msra.mxu1 (!%p207_p3), %v2681_v3  ;;  %v2689_v18 = vpack.c.bf16 (!%p207_p3), %v1943_v14, %v1942_v12  ;;  %v1945_v21 = vld [vmem:[%s3902_s1 + $0xb8] sm:$0xff] (!%p207_p3)  ;;  %v3247_v33 = vadd.s32 (!%p207_p3), 8, %v3226_v24  ;;  %vm407_vm0 = vcmp.ge.s32.totalorder (!%p207_p3), %v3226_v24, 1 }
   0xb   : > { %2812 = vmatpush3.bf16.msra.mxu0 (!%p207_p3), %v2809_v8  ;;  %2686 = vmatprep.subr.bf16.mxu1 (!%p207_p3), %v2685_v9  ;;  %v2817_v19 = vpack.c.bf16 (!%p207_p3), %v1991_v16, %v1990_v15  ;;  %v1992_v22 = vld [vmem:[%s3902_s1 + $0x230] sm:$0xff] (!%p207_p3)  ;;  %v1993_v23 = vld [vmem:[%s3902_s1 + $0x238] sm:$0xff] (!%p207_p3)  ;;  %v2693_v25 = vpack.c.bf16 (!%p207_p3), %v1945_v21, %v1944_v20  ;;  %v1946_v27 = vld [vmem:[%s3902_s1 + $0xc0] sm:$0xff] (!%p207_p3) }
   0xc   : > { %2814 = vmatprep.subr.bf16.mxu0 (!%p207_p3), %v2813_v13  ;;  %v2821_v26 = vpack.c.bf16 (!%p207_p3), %v1993_v23, %v1992_v22  ;;  %v1947_v28 = vld [vmem:[%s3902_s1 + $0xc8] sm:$0xff] (!%p207_p3)  ;;  %v1994_v30 = vld [vmem:[%s3902_s1 + $0x240] sm:$0xff] (!%p207_p3)  ;;  %v1948_v42 = vld [vmem:[%s3902_s1 + $0xd0] sm:$0xff] (!%p207_p3)  ;;  %vm430_vm1 = vcmp.le.s32.totalorder (!%p207_p3), %v3247_v33, 8 }
   0xd   : > { %v1995_v31 = vld [vmem:[%s3902_s1 + $0x248] sm:$0xff] (!%p207_p3)  ;;  %v3253_v35 = vld [vmem:[%s3903_s2] ss:$0 sm:$0xff] (!%p207_p3)  ;;  %v2697_v37 = vpack.c.bf16 (!%p207_p3), %v1947_v28, %v1946_v27  ;;  %v1949_v43 = vld [vmem:[%s3902_s1 + $0xd8] sm:$0xff] (!%p207_p3) }
   0xe   : > { %s3912_s18 = smov (!%p245_p4, %s3111_s18), 1  ;;  %2688 = vmatpush3.bf16.msra.mxu1 %v2685_v9  ;;  %v3258_v36 = vld [vmem:[%s3904_s3] ss:$0 sm:$0xff]  ;;  %v2825_v41 = vpack.c.bf16 %v1995_v31, %v1994_v30  ;;  %v1996_v46 = vld [vmem:[%s3902_s1 + $0x250] sm:$0xff]  ;;  %v1997_v47 = vld [vmem:[%s3902_s1 + $0x258] sm:$0xff]  ;;  %v2701_v52 = vpack.c.bf16 %v1949_v43, %v1948_v42 }
   0xf   : > { %s3049_s25 = smul.u32 160, %s3912_s18  ;;  %2816 = vmatpush3.bf16.msra.mxu0 %v2813_v13  ;;  %2690 = vmatprep.subr.bf16.mxu1 %v2689_v18  ;;  %v555_v29 = vld [vmem:[#allocation2 + $0x1] sm:$0xff]  ;;  %v2829_v56 = vpack.c.bf16 %v1997_v47, %v1996_v46  ;;  %v1952_v62 = vld [vmem:[%s3902_s1 + $0xf0] sm:$0xff]  ;;  %v1953_v2 = vld [vmem:[%s3902_s1 + $0xf8] sm:$0xff]  ;;  %s1935_s29 = sshll.u32 %s3912_s18, 1 }
  0x10   : > { %2818 = vmatprep.subr.bf16.mxu0 %v2817_v19  ;;  %2317 = vmatprep.mubr.f32.mxu1 %v555_v29  ;;  %v1950_v57 = vld [vmem:[%s3902_s1 + $0xe0] sm:$0xff]  ;;  %v1951_v58 = vld [vmem:[%s3902_s1 + $0xe8] sm:$0xff]  ;;  %v2000_v8 = vld [vmem:[%s3902_s1 + $0x270] sm:$0xff]  ;;  %s266_s7 = scalar_lea.vmem %s3906_s5, %s1935_s29 }
  0x11   : > { %s3231_s11 = scalar_lea.vmem %s3901_s0, %s3049_s25  ;;  %v1998_v60 = vld [vmem:[%s3902_s1 + $0x260] sm:$0xff]  ;;  %v1999_v61 = vld [vmem:[%s3902_s1 + $0x268] sm:$0xff]  ;;  %v2705_v6 = vpack.c.bf16 %v1951_v58, %v1950_v57  ;;  %v2001_v9 = vld [vmem:[%s3902_s1 + $0x278] sm:$0xff]  ;;  %s2068_s25 = sshll.u32 %s3912_s18, 6 }
  0x12   : > { %v272_v32 = vld [vmem:[%s3231_s11 + $0x10] sm:$0xff]  ;;  %2692 = vmatpush3.bf16.msra.mxu1 %v2689_v18  ;;  %v273_v34 = vld [vmem:[%s3231_s11 + $0x18] sm:$0x3]  ;;  %v274_v40 = vld [vmem:[%s3231_s11 + $0x20] sm:$0xff]  ;;  %v2833_v14 = vpack.c.bf16 %v1999_v61, %v1998_v60  ;;  %s258_s28 = scalar_lea.vmem %s3905_s4, %s2068_s25 }
  0x13   : > { %2820 = vmatpush3.bf16.msra.mxu0 %v2817_v19  ;;  %2694 = vmatprep.subr.bf16.mxu1 %v2693_v25  ;;  %v300_v38 = vmul.f32 %v3253_v35, %v272_v32  ;;  %v301_v39 = vmul.f32 %v3253_v35, %v273_v34  ;;  %v275_v44 = vld [vmem:[%s3231_s11 + $0x28] sm:$0x3]  ;;  %v302_v45 = vmul.f32 %v3253_v35, %v274_v40  ;;  %v276_v4 = vld [vmem:[%s3231_s11 + $0x30] sm:$0xff]  ;;  %v277_v5 = vld [vmem:[%s3231_s11 + $0x38] sm:$0x3] }
  0x14   : > { %2822 = vmatprep.subr.bf16.mxu0 %v2821_v26  ;;  %v303_v50 = vmul.f32 %v3253_v35, %v275_v44  ;;  %v304_v11 = vmul.f32 %v3253_v35, %v276_v4  ;;  %v305_v12 = vmul.f32 %v3253_v35, %v277_v5  ;;  %v278_v13 = vld [vmem:[%s3231_s11 + $0x40] sm:$0xff]  ;;  %v540_v16 = vld [vmem:[%s3902_s1 + $0x8] sm:$0xff]  ;;  %v3335_v19 = vpack.c.bf16 %v1953_v2, %v1952_v62  ;;  %v280_v23 = vld [vmem:[%s3231_s11 + $0x50] sm:$0xff] }
  0x15   : > { %v326_v48 = vadd.f32 %v3258_v36, %v300_v38  ;;  %v327_v49 = vadd.f32 %v3258_v36, %v301_v39  ;;  %v328_v51 = vadd.f32 %v3258_v36, %v302_v45  ;;  %v539_v15 = vld [vmem:[%s3902_s1] sm:$0xff]  ;;  %v279_v17 = vld [vmem:[%s3231_s11 + $0x48] sm:$0x3]  ;;  %v306_v18 = vmul.f32 %v3253_v35, %v278_v13  ;;  %v284_v45 = vld [vmem:[%s3231_s11 + $0x70] sm:$0xff] }
  0x16   : > { %2696 = vmatpush3.bf16.msra.mxu1 %v2693_v25  ;;  %v329_v55 = vadd.f32 %v3258_v36, %v303_v50  ;;  %v330_v20 = vadd.f32 %v3258_v36, %v304_v11  ;;  %v331_v21 = vadd.f32 %v3258_v36, %v305_v12  ;;  %v307_v22 = vmul.f32 %v3253_v35, %v279_v17  ;;  %v281_v25 = vld [vmem:[%s3231_s11 + $0x58] sm:$0x3]  ;;  %v282_v30 = vld [vmem:[%s3231_s11 + $0x60] sm:$0xff]  ;;  %v283_v31 = vld [vmem:[%s3231_s11 + $0x68] sm:$0x3] }
  0x17   : > { %2824 = vmatpush3.bf16.msra.mxu0 %v2821_v26  ;;  %2698 = vmatprep.subr.bf16.mxu1 %v2697_v37  ;;  %v3283_v53 = vmax.f32 %v326_v48, 0.0  ;;  %v347_v54 = vmax.f32 %v327_v49, 0.0  ;;  %v3292_v59 = vmax.f32 %v328_v51, 0.0  ;;  %v2837_v26 = vpack.c.bf16 %v2001_v9, %v2000_v8  ;;  %v2002_v39 = vld [vmem:[%s3902_s1 + $0x280] sm:$0xff]  ;;  %v2003_v40 = vld [vmem:[%s3902_s1 + $0x288] sm:$0xff]  ;;  %v2005_v8 = vld [vmem:[%s3902_s1 + $0x298] sm:$0xff] }
  0x18   : > { %2826 = vmatprep.subr.bf16.mxu0 %v2825_v41  ;;  %v349_v1 = vmax.f32 %v329_v55, 0.0  ;;  %v332_v27 = vadd.f32 %v3258_v36, %v306_v18  ;;  %v308_v28 = vmul.f32 %v3253_v35, %v280_v23  ;;  %v309_v29 = vmul.f32 %v3253_v35, %v281_v25  ;;  %v285_v51 = vld [vmem:[%s3231_s11 + $0x78] sm:$0x3]  ;;  %v286_v57 = vld [vmem:[%s3231_s11 + $0x80] sm:$0xff] }
  0x19   : > { %v493_v63 = vsel %vm407_vm0, %v3283_v53, 0.0  ;;  %v494_v0 = vsel %vm430_vm1, %v347_v54, 0.0  ;;  %v495_v3 = vsel %vm407_vm0, %v3292_v59, 0.0  ;;  %v3347_v32 = vpack.c.bf16 %v540_v16, %v539_v15  ;;  %v2006_v25 = vld [vmem:[%s3902_s1 + $0x2a0] sm:$0xff] }
  0x1a   : > { %2700 = vmatpush3.bf16.msra.mxu1 %v2697_v37  ;;  %513 = vst [vmem:[#allocation2 + $0x10] sm:$0xff] %v493_v63  ;;  %514 = vst [vmem:[#allocation2 + $0x18] sm:$0x3] %v494_v0  ;;  %v496_v10 = vsel %vm430_vm1, %v349_v1, 0.0  ;;  %v3349_v34 = vmax.f32 %v330_v20, 0.0  ;;  %v351_v37 = vmax.f32 %v331_v21, 0.0  ;;  %v333_v38 = vadd.f32 %v3258_v36, %v307_v22 }
  0x1b   : > { %2828 = vmatpush3.bf16.msra.mxu0 %v2825_v41  ;;  %2702 = vmatprep.subr.bf16.mxu1 %v2701_v52  ;;  %515 = vst [vmem:[#allocation2 + $0x20] sm:$0xff] %v495_v3  ;;  %516 = vst [vmem:[#allocation2 + $0x28] sm:$0x3] %v496_v10  ;;  %v3358_v41 = vmax.f32 %v332_v27, 0.0  ;;  %v334_v42 = vadd.f32 %v3258_v36, %v308_v28  ;;  %v335_v43 = vadd.f32 %v3258_v36, %v309_v29  ;;  %v287_v63 = vld [vmem:[%s3231_s11 + $0x88] sm:$0x3] }
  0x1c   : > { %2830 = vmatprep.subr.bf16.mxu0 %v2829_v56  ;;  %v310_v44 = vmul.f32 %v3253_v35, %v282_v30  ;;  %v497_v47 = vsel %vm407_vm0, %v3349_v34, 0.0  ;;  %v498_v48 = vsel %vm430_vm1, %v351_v37, 0.0  ;;  %v353_v49 = vmax.f32 %v333_v38, 0.0  ;;  %v541_v0 = vld [vmem:[%s3902_s1 + $0x10] sm:$0xff]  ;;  %v542_v1 = vld [vmem:[%s3902_s1 + $0x18] sm:$0xff]  ;;  %v544_v21 = vld [vmem:[%s3902_s1 + $0x28] sm:$0xff] }
  0x1d   : > { %v311_v50 = vmul.f32 %v3253_v35, %v283_v31  ;;  %517 = vst [vmem:[#allocation2 + $0x30] sm:$0xff] %v497_v47  ;;  %518 = vst [vmem:[#allocation2 + $0x38] sm:$0x3] %v498_v48  ;;  %v3374_v54 = vmax.f32 %v334_v42, 0.0  ;;  %v355_v55 = vmax.f32 %v335_v43, 0.0  ;;  %v2841_v58 = vpack.c.bf16 %v2003_v40, %v2002_v39  ;;  %v545_v39 = vld [vmem:[%s3902_s1 + $0x30] sm:$0xff] }
  0x1e   : > { %2704 = vmatpush3.bf16.msra.mxu1 %v2701_v52  ;;  %v499_v52 = vsel %vm407_vm0, %v3358_v41, 0.0  ;;  %v500_v60 = vsel %vm430_vm1, %v353_v49, 0.0  ;;  %v312_v62 = vmul.f32 %v3253_v35, %v284_v45  ;;  %v313_v5 = vmul.f32 %v3253_v35, %v285_v51  ;;  %v546_v40 = vld [vmem:[%s3902_s1 + $0x38] sm:$0xff]  ;;  %v2008_v43 = vld [vmem:[%s3902_s1 + $0x2b0] sm:$0xff]  ;;  %v547_v48 = vld [vmem:[%s3902_s1 + $0x40] sm:$0xff] }
  0x1f   : > { %2832 = vmatpush3.bf16.msra.mxu0 %v2829_v56  ;;  %2706 = vmatprep.subr.bf16.mxu1 %v2705_v6  ;;  %v336_v56 = vadd.f32 %v3258_v36, %v310_v44  ;;  %519 = vst [vmem:[#allocation2 + $0x40] sm:$0xff] %v499_v52  ;;  %v337_v61 = vadd.f32 %v3258_v36, %v311_v50  ;;  %520 = vst [vmem:[#allocation2 + $0x48] sm:$0x3] %v500_v60  ;;  %v501_v2 = vsel %vm407_vm0, %v3374_v54, 0.0  ;;  %v2009_v44 = vld [vmem:[%s3902_s1 + $0x2b8] sm:$0xff]  ;;  %v548_v49 = vld [vmem:[%s3902_s1 + $0x48] sm:$0xff] }
  0x20   : > { %2834 = vmatprep.subr.bf16.mxu0 %v2833_v14  ;;  %v502_v3 = vsel %vm430_vm1, %v355_v55, 0.0  ;;  %521 = vst [vmem:[#allocation2 + $0x50] sm:$0xff] %v501_v2  ;;  %v338_v10 = vadd.f32 %v3258_v36, %v312_v62  ;;  %v314_v11 = vmul.f32 %v3253_v35, %v286_v57  ;;  %v339_v13 = vadd.f32 %v3258_v36, %v313_v5  ;;  %v2010_v50 = vld [vmem:[%s3902_s1 + $0x2c0] sm:$0xff]  ;;  %v2011_v51 = vld [vmem:[%s3902_s1 + $0x2c8] sm:$0xff]  ;;  %v549_v57 = vld [vmem:[%s3902_s1 + $0x50] sm:$0xff] }
  0x21   : > { %v1067_v46 = vld [vmem:[#allocation2 + $0x11] sm:$0xff]  ;;  %v3395_v4 = vmax.f32 %v336_v56, 0.0  ;;  %522 = vst [vmem:[#allocation2 + $0x58] sm:$0x3] %v502_v3  ;;  %v357_v9 = vmax.f32 %v337_v61, 0.0  ;;  %v2717_v16 = vpack.c.bf16 %v542_v1, %v541_v0  ;;  %v2725_v33 = vpack.c.bf16 %v546_v40, %v545_v39  ;;  %v551_v2 = vld [vmem:[%s3902_s1 + $0x60] sm:$0xff] }
  0x22   : > { %2708 = vmatpush3.bf16.msra.mxu1 %v2705_v6  ;;  %2493 = vmatprep.mubr.f32.mxu0 %v1067_v46  ;;  %v2004_v6 = vld [vmem:[%s3902_s1 + $0x290] sm:$0xff]  ;;  %v3413_v15 = vld [vmem:[#allocation2 + $0x21] sm:$0xff]  ;;  %v3417_v18 = vmax.f32 %v338_v10, 0.0  ;;  %v359_v22 = vmax.f32 %v339_v13, 0.0  ;;  %v2853_v47 = vpack.c.bf16 %v2009_v44, %v2008_v43  ;;  %v2729_v55 = vpack.c.bf16 %v548_v49, %v547_v48  ;;  %v2013_v62 = vld [vmem:[%s3902_s1 + $0x2d8] sm:$0xff] }
  0x23   : > { %2836 = vmatpush3.bf16.msra.mxu0 %v2833_v14  ;;  %2710 = vmatprep.subr.bf16.mxu1 %v3335_v19  ;;  %v503_v12 = vsel %vm407_vm0, %v3395_v4, 0.0  ;;  %v315_v14 = vmul.f32 %v3253_v35, %v287_v63  ;;  %v504_v17 = vsel %vm430_vm1, %v357_v9, 0.0  ;;  %v2845_v20 = vpack.c.bf16 %v2005_v8, %v2004_v6  ;;  %v543_v35 = vld [vmem:[%s3902_s1 + $0x20] sm:$0xff]  ;;  %v2012_v61 = vld [vmem:[%s3902_s1 + $0x2d0] sm:$0xff]  ;;  %v552_v3 = vld [vmem:[%s3902_s1 + $0x68] sm:$0xff] }
  0x24   : > { %2838 = vmatprep.subr.bf16.mxu0 %v2837_v26  ;;  %523 = vst [vmem:[#allocation2 + $0x60] sm:$0xff] %v503_v12  ;;  %524 = vst [vmem:[#allocation2 + $0x68] sm:$0x3] %v504_v17  ;;  %v505_v27 = vsel %vm407_vm0, %v3417_v18, 0.0  ;;  %v506_v29 = vsel %vm430_vm1, %v359_v22, 0.0  ;;  %v2721_v31 = vpack.c.bf16 %v544_v21, %v543_v35  ;;  %v2857_v56 = vpack.c.bf16 %v2011_v51, %v2010_v50  ;;  %v3507_v63 = vld [vmem:[#allocation2 + $0x12] sm:$0xff] }
  0x25   : > { %v341_v23 = vadd.f32 %v3258_v36, %v315_v14  ;;  %525 = vst [vmem:[#allocation2 + $0x70] sm:$0xff] %v505_v27  ;;  %526 = vst [vmem:[#allocation2 + $0x78] sm:$0x3] %v506_v29  ;;  %v2861_v1 = vpack.c.bf16 %v2013_v62, %v2012_v61  ;;  %v2014_v5 = vld [vmem:[%s3902_s1 + $0x2e0] sm:$0xff]  ;;  %v2015_v6 = vld [vmem:[%s3902_s1 + $0x2e8] sm:$0xff]  ;;  %v2737_v8 = vpack.c.bf16 %v552_v3, %v551_v2 }
  0x26   : > { %2712 = vmatpush3.bf16.msra.mxu1 %v3335_v19  ;;  %v340_v19 = vadd.f32 %v3258_v36, %v314_v11  ;;  %v3440_v36 = vld [vmem:[#allocation2 + $0x31] sm:$0xff]  ;;  %v3444_v37 = vld [vmem:[#allocation2 + $0x41] sm:$0xff]  ;;  %v2865_v9 = vpack.c.bf16 %v2015_v6, %v2014_v5 }
  0x27   : > { %2840 = vmatpush3.bf16.msra.mxu0 %v2837_v26  ;;  %2714 = vmatprep.subr.bf16.mxu1 %v3347_v32  ;;  %v2007_v26 = vld [vmem:[%s3902_s1 + $0x2a8] sm:$0xff]  ;;  %v361_v30 = vmax.f32 %v341_v23, 0.0  ;;  %v553_v10 = vld [vmem:[%s3902_s1 + $0x70] sm:$0xff]  ;;  %v554_v11 = vld [vmem:[%s3902_s1 + $0x78] sm:$0xff] }
  0x28   : > { %2842 = vmatprep.subr.bf16.mxu0 %v2841_v58  ;;  %v3436_v28 = vmax.f32 %v340_v19, 0.0  ;;  %v3467_v45 = vld [vmem:[#allocation2 + $0x51] sm:$0xff]  ;;  %v2741_v14 = vpack.c.bf16 %v554_v11, %v553_v10  ;;  %v1954_v17 = vld [vmem:[%s3902_s1 + $0x100] sm:$0xff]  ;;  %v1955_v19 = vld [vmem:[%s3902_s1 + $0x108] sm:$0xff] }
  0x29   : > { %2318 = vmatmul.mubr.f32.vlgmr.msra.gmra.mrb[0].mxu1 %v1067_v46  ;;  %v508_v42 = vsel %vm430_vm1, %v361_v30, 0.0  ;;  %v2016_v12 = vld [vmem:[%s3902_s1 + $0x2f0] sm:$0xff]  ;;  %v2017_v13 = vld [vmem:[%s3902_s1 + $0x2f8] sm:$0xff]  ;;  %v2019_v35 = vld [vmem:[%s3902_s1 + $0x308] sm:$0xff]  ;;  %v2745_v21 = vpack.c.bf16 %v1955_v19, %v1954_v17 }
  0x2a   : > { %2716 = vmatpush3.bf16.msra.mxu1 %v3347_v32  ;;  %2494 = vmatmul.mubr.f32.vlgmr.msra.gmra.mrb[0].mxu0 %v3413_v15  ;;  %v507_v38 = vsel %vm407_vm0, %v3436_v28, 0.0  ;;  %v2849_v32 = vpack.c.bf16 %v2007_v26, %v2006_v25  ;;  %528 = vst [vmem:[#allocation2 + $0x88] sm:$0x3] %v508_v42  ;;  %v1956_v23 = vld [vmem:[%s3902_s1 + $0x110] sm:$0xff]  ;;  %v1957_v25 = vld [vmem:[%s3902_s1 + $0x118] sm:$0xff]  ;;  %v3559_v29 = vld [vmem:[#allocation2 + $0x22] sm:$0xff] }
  0x2b   : > { %2844 = vmatpush3.bf16.msra.mxu0 %v2841_v58  ;;  %2718 = vmatprep.subr.bf16.mxu1 %v2717_v16  ;;  %527 = vst [vmem:[#allocation2 + $0x80] sm:$0xff] %v507_v38  ;;  %v3469_v46 = vld [vmem:[#allocation2 + $0x61] sm:$0xff]  ;;  %v550_v58 = vld [vmem:[%s3902_s1 + $0x58] sm:$0xff]  ;;  %v2020_v26 = vld [vmem:[%s3902_s1 + $0x310] sm:$0xff]  ;;  %v2749_v30 = vpack.c.bf16 %v1957_v25, %v1956_v23 }
  0x2c   : > { %2846 = vmatprep.subr.bf16.mxu0 %v2845_v20  ;;  %2320 = vmatprep.mubr.f32.mxu1 %v3413_v15  ;;  %v3487_v52 = vld [vmem:[#allocation2 + $0x71] sm:$0xff]  ;;  %v2733_v0 = vpack.c.bf16 %v550_v58, %v549_v57  ;;  %v1958_v38 = vld [vmem:[%s3902_s1 + $0x120] sm:$0xff]  ;;  %v2023_v40 = vld [vmem:[%s3902_s1 + $0x328] sm:$0xff] }
  0x2d   : > { %2496 = vmatprep.mubr.f32.mxu0 %v3440_v36  ;;  %2321 = vmatmul.mubr.f32.gmra.mrb[2].mxu1 %v3440_v36  ;;  %v2021_v27 = vld [vmem:[%s3902_s1 + $0x318] sm:$0xff]  ;;  %v2022_v39 = vld [vmem:[%s3902_s1 + $0x320] sm:$0xff]  ;;  %v2024_v49 = vld [vmem:[%s3902_s1 + $0x330] sm:$0xff] }
  0x2e   : > { %2720 = vmatpush3.bf16.msra.mxu1 %v2717_v16  ;;  %2497 = vmatmul.mubr.f32.gmra.mrb[2].mxu0 %v3444_v37  ;;  %v2869_v16 = vpack.c.bf16 %v2017_v13, %v2016_v12  ;;  %v3577_v42 = vld [vmem:[#allocation2 + $0x32] sm:$0xff]  ;;  %v3579_v44 = vld [vmem:[#allocation2 + $0x42] sm:$0xff] }
  0x2f   : > { %2848 = vmatpush3.bf16.msra.mxu0 %v2845_v20  ;;  %2722 = vmatprep.subr.bf16.mxu1 %v2721_v31  ;;  %v2018_v20 = vld [vmem:[%s3902_s1 + $0x300] sm:$0xff]  ;;  %v1961_v48 = vld [vmem:[%s3902_s1 + $0x138] sm:$0xff]  ;;  %v1963_v61 = vld [vmem:[%s3902_s1 + $0x148] sm:$0xff] }
  0x30   : > { %2850 = vmatprep.subr.bf16.mxu0 %v2849_v32  ;;  %2323 = vmatprep.mubr.f32.mxu1 %v3444_v37  ;;  %v2873_v22 = vpack.c.bf16 %v2019_v35, %v2018_v20  ;;  %v2025_v50 = vld [vmem:[%s3902_s1 + $0x338] sm:$0xff]  ;;  %v1962_v58 = vld [vmem:[%s3902_s1 + $0x140] sm:$0xff]  ;;  %v1964_v6 = vld [vmem:[%s3902_s1 + $0x150] sm:$0xff] }
  0x31   : > { %2499 = vmatprep.mubr.f32.mxu0 %v3467_v45  ;;  %2324 = vmatmul.mubr.f32.gmra.mrb[4].mxu1 %v3467_v45  ;;  %v3601_v51 = vld [vmem:[#allocation2 + $0x52] sm:$0xff]  ;;  %v2885_v57 = vpack.c.bf16 %v2025_v50, %v2024_v49  ;;  %v2026_v62 = vld [vmem:[%s3902_s1 + $0x340] sm:$0xff]  ;;  %v2761_v2 = vpack.c.bf16 %v1963_v61, %v1962_v58  ;;  %v2031_v19 = vld [vmem:[%s3902_s1 + $0x368] sm:$0xff] }
  0x32   : > { %2724 = vmatpush3.bf16.msra.mxu1 %v2721_v31  ;;  %2500 = vmatmul.mubr.f32.gmra.mrb[4].mxu0 %v3469_v46  ;;  %v3496_v60 = vld [vmem:[#allocation2 + $0x81] sm:$0xff]  ;;  %v2877_v31 = vpack.c.bf16 %v2021_v27, %v2020_v26  ;;  %v2029_v10 = vld [vmem:[%s3902_s1 + $0x358] sm:$0xff]  ;;  %v2032_v23 = vld [vmem:[%s3902_s1 + $0x370] sm:$0xff] }
  0x33   : > { %2852 = vmatpush3.bf16.msra.mxu0 %v2849_v32  ;;  %2726 = vmatprep.subr.bf16.mxu1 %v2725_v33  ;;  %v1959_v32 = vld [vmem:[%s3902_s1 + $0x128] sm:$0xff]  ;;  %v2030_v17 = vld [vmem:[%s3902_s1 + $0x360] sm:$0xff]  ;;  %v2033_v25 = vld [vmem:[%s3902_s1 + $0x378] sm:$0xff] }
  0x34   : > { %2854 = vmatprep.subr.bf16.mxu0 %v2853_v47  ;;  %2326 = vmatprep.mubr.f32.mxu1 %v3469_v46  ;;  %v2753_v43 = vpack.c.bf16 %v1959_v32, %v1958_v38  ;;  %v3627_v3 = vld [vmem:[#allocation2 + $0x82] sm:$0xff]  ;;  %v2897_v35 = vpack.c.bf16 %v2031_v19, %v2030_v17  ;;  %v2901_v27 = vpack.c.bf16 %v2033_v25, %v2032_v23  ;;  %v1980_v17 = vld [vmem:[%s3902_s1 + $0x1d0] sm:$0xff]  ;;  %v1981_v19 = vld [vmem:[%s3902_s1 + $0x1d8] sm:$0xff] }
  0x35   : > { %2502 = vmatprep.mubr.f32.mxu0 %v3487_v52  ;;  %2327 = vmatmul.mubr.f32.gmra.mrb[6].mxu1 %v3487_v52  ;;  %v790_v11 = vld [vmem:[#allocation2 + $0x2] sm:$0xff] }
  0x36   : > { %2728 = vmatpush3.bf16.msra.mxu1 %v2725_v33  ;;  %2503 = vmatmul.mubr.f32.gmra.mrb[6].mxu0 %v3496_v60  ;;  %v2881_v33 = vpack.c.bf16 %v2023_v40, %v2022_v39  ;;  %v2034_v38 = vld [vmem:[%s3902_s1 + $0x380] sm:$0xff]  ;;  %v2035_v32 = vld [vmem:[%s3902_s1 + $0x388] sm:$0xff] }
  0x37   : > { %2856 = vmatpush3.bf16.msra.mxu0 %v2853_v47  ;;  %2730 = vmatprep.subr.bf16.mxu1 %v2729_v55  ;;  %v1960_v47 = vld [vmem:[%s3902_s1 + $0x130] sm:$0xff]  ;;  %v2905_v40 = vpack.c.bf16 %v2035_v32, %v2034_v38  ;;  %v2038_v58 = vld [vmem:[%s3902_s1 + $0x3a0] sm:$0xff]  ;;  %v2039_v61 = vld [vmem:[%s3902_s1 + $0x3a8] sm:$0xff] }
  0x38   : > { %2858 = vmatprep.subr.bf16.mxu0 %v2857_v56  ;;  %2361 = vmatprep.mubr.f32.mxu1 %v3121_v7  ;;  %v1982_v23 = vld [vmem:[%s3902_s1 + $0x1e0] sm:$0xff]  ;;  %v1983_v25 = vld [vmem:[%s3902_s1 + $0x1e8] sm:$0xff]  ;;  %v2048_v38 = vld [vmem:[%s3902_s1 + $0x3f0] sm:$0xff] }
  0x39   : > { %2537 = vmatprep.mubr.f32.mxu0 %v3507_v63 }
  0x3a   : > { %2732 = vmatpush3.bf16.msra.mxu1 %v2729_v55  ;;  %v2757_v55 = vpack.c.bf16 %v1961_v48, %v1960_v47  ;;  %v2036_v47 = vld [vmem:[%s3902_s1 + $0x390] sm:$0xff]  ;;  %v2037_v48 = vld [vmem:[%s3902_s1 + $0x398] sm:$0xff] }
  0x3b   : > { %2860 = vmatpush3.bf16.msra.mxu0 %v2857_v56  ;;  %2734 = vmatprep.subr.bf16.mxu1 %v2733_v0  ;;  %v3603_v56 = vld [vmem:[#allocation2 + $0x62] sm:$0xff]  ;;  %v2909_v50 = vpack.c.bf16 %v2037_v48, %v2036_v47  ;;  %v2052_v47 = vld [vmem:[%s3902_s1 + $0x410] sm:$0xff]  ;;  %v2053_v48 = vld [vmem:[%s3902_s1 + $0x418] sm:$0xff] }
  0x3c   : > { %2862 = vmatprep.subr.bf16.mxu0 %v2861_v1 }
  0x3e   : > { %2736 = vmatpush3.bf16.msra.mxu1 %v2733_v0  ;;  %v2027_v0 = vld [vmem:[%s3902_s1 + $0x348] sm:$0xff] }
  0x3f   : > { %2864 = vmatpush3.bf16.msra.mxu0 %v2861_v1  ;;  %2738 = vmatprep.subr.bf16.mxu1 %v2737_v8  ;;  %v3625_v1 = vld [vmem:[#allocation2 + $0x72] sm:$0xff]  ;;  %v2889_v5 = vpack.c.bf16 %v2027_v0, %v2026_v62  ;;  %v2913_v0 = vpack.c.bf16 %v2039_v61, %v2038_v58 }
  0x40   : > { %2866 = vmatprep.subr.bf16.mxu0 %v2865_v9  ;;  %v2065_v58 = vld [vmem:[%s3902_s1 + $0x478] sm:$0xff] }
  0x42   : > { %2740 = vmatpush3.bf16.msra.mxu1 %v2737_v8  ;;  %v1965_v8 = vld [vmem:[%s3902_s1 + $0x158] sm:$0xff] }
  0x43   : > { %2868 = vmatpush3.bf16.msra.mxu0 %v2865_v9  ;;  %2742 = vmatprep.subr.bf16.mxu1 %v2741_v14  ;;  %v2028_v9 = vld [vmem:[%s3902_s1 + $0x350] sm:$0xff]  ;;  %v2765_v12 = vpack.c.bf16 %v1965_v8, %v1964_v6  ;;  %v2041_v6 = vld [vmem:[%s3902_s1 + $0x3b8] sm:$0xff] }
  0x44   : > { %2870 = vmatprep.subr.bf16.mxu0 %v2869_v16  ;;  %v2893_v13 = vpack.c.bf16 %v2029_v10, %v2028_v9  ;;  %v1978_v10 = vld [vmem:[%s3902_s1 + $0x1c0] sm:$0xff] }
  0x46   : > { %2744 = vmatpush3.bf16.msra.mxu1 %v2741_v14  ;;  %v1966_v14 = vld [vmem:[%s3902_s1 + $0x160] sm:$0xff] }
  0x47   : > { %2872 = vmatpush3.bf16.msra.mxu0 %v2869_v16  ;;  %2746 = vmatprep.subr.bf16.mxu1 %v2745_v21  ;;  %v1967_v16 = vld [vmem:[%s3902_s1 + $0x168] sm:$0xff] }
  0x48   : > { %2874 = vmatprep.subr.bf16.mxu0 %v2873_v22  ;;  %v2769_v20 = vpack.c.bf16 %v1967_v16, %v1966_v14 }
  0x49   : > { %3075 = vmatmul.mubr.msk.f32.vlgmr.msra.gmra.mrb[0].mxu1 %vm407_vm0, %v3283_v53 }
  0x4a   : > { %2748 = vmatpush3.bf16.msra.mxu1 %v2745_v21  ;;  %2538 = vmatmul.mubr.f32.vlgmr.msra.gmra.mrb[0].mxu0 %v3559_v29  ;;  %v1968_v21 = vld [vmem:[%s3902_s1 + $0x170] sm:$0xff] }
  0x4b   : > { %2876 = vmatpush3.bf16.msra.mxu0 %v2873_v22  ;;  %2750 = vmatprep.subr.bf16.mxu1 %v2749_v30  ;;  %v1969_v22 = vld [vmem:[%s3902_s1 + $0x178] sm:$0xff] }
  0x4c   : > { %2878 = vmatprep.subr.bf16.mxu0 %v2877_v31  ;;  %3076 = vmatprep.mubr.msk.f32.mxu1 %vm407_vm0, %v3292_v59  ;;  %v2773_v26 = vpack.c.bf16 %v1969_v22, %v1968_v21  ;;  %v2797_v21 = vpack.c.bf16 %v1981_v19, %v1980_v17 }
  0x4d   : > { %2540 = vmatprep.mubr.f32.mxu0 %v3577_v42  ;;  %3077 = vmatmul.mubr.msk.f32.gmra.mrb[2].mxu1 %vm407_vm0, %v3349_v34 }
  0x4e   : > { %2752 = vmatpush3.bf16.msra.mxu1 %v2749_v30  ;;  %2541 = vmatmul.mubr.f32.gmra.mrb[2].mxu0 %v3579_v44  ;;  %v1970_v30 = vld [vmem:[%s3902_s1 + $0x180] sm:$0xff] }
  0x4f   : > { %2880 = vmatpush3.bf16.msra.mxu0 %v2877_v31  ;;  %2754 = vmatprep.subr.bf16.mxu1 %v2753_v43  ;;  %v1971_v31 = vld [vmem:[%s3902_s1 + $0x188] sm:$0xff] }
  0x50   : > { %2882 = vmatprep.subr.bf16.mxu0 %v2881_v33  ;;  %3078 = vmatprep.mubr.msk.f32.mxu1 %vm407_vm0, %v3358_v41  ;;  %v2777_v39 = vpack.c.bf16 %v1971_v31, %v1970_v30  ;;  %v1985_v31 = vld [vmem:[%s3902_s1 + $0x1f8] sm:$0xff] }
  0x51   : > { %2543 = vmatprep.mubr.f32.mxu0 %v3601_v51  ;;  %3079 = vmatmul.mubr.msk.f32.gmra.mrb[4].mxu1 %vm407_vm0, %v3374_v54 }
  0x52   : > { %2756 = vmatpush3.bf16.msra.mxu1 %v2753_v43  ;;  %2544 = vmatmul.mubr.f32.gmra.mrb[4].mxu0 %v3603_v56  ;;  %v1972_v43 = vld [vmem:[%s3902_s1 + $0x190] sm:$0xff] }
  0x53   : > { %2884 = vmatpush3.bf16.msra.mxu0 %v2881_v33  ;;  %2758 = vmatprep.subr.bf16.mxu1 %v2757_v55  ;;  %v1973_v33 = vld [vmem:[%s3902_s1 + $0x198] sm:$0xff] }
  0x54   : > { %2886 = vmatprep.subr.bf16.mxu0 %v2885_v57  ;;  %3080 = vmatprep.mubr.msk.f32.mxu1 %vm407_vm0, %v3395_v4  ;;  %v2781_v49 = vpack.c.bf16 %v1973_v33, %v1972_v43  ;;  %v2051_v43 = vld [vmem:[%s3902_s1 + $0x408] sm:$0xff] }
  0x55   : > { %2546 = vmatprep.mubr.f32.mxu0 %v3625_v1  ;;  %3081 = vmatmul.mubr.msk.f32.gmra.mrb[6].mxu1 %vm407_vm0, %v3417_v18 }
  0x56   : > { %2760 = vmatpush3.bf16.msra.mxu1 %v2757_v55  ;;  %2547 = vmatmul.mubr.f32.gmra.mrb[6].mxu0 %v3627_v3  ;;  %v1974_v55 = vld [vmem:[%s3902_s1 + $0x1a0] sm:$0xff] }
  0x57   : > { %2888 = vmatpush3.bf16.msra.mxu0 %v2885_v57  ;;  %2762 = vmatprep.subr.bf16.mxu1 %v2761_v2  ;;  %v1975_v57 = vld [vmem:[%s3902_s1 + $0x1a8] sm:$0xff] }
  0x58   : > { %2890 = vmatprep.subr.bf16.mxu0 %v2889_v5  ;;  %2405 = vmatprep.mubr.f32.mxu1 %v790_v11  ;;  %v2785_v62 = vpack.c.bf16 %v1975_v57, %v1974_v55  ;;  %v1979_v11 = vld [vmem:[%s3902_s1 + $0x1c8] sm:$0xff]  ;;  %v2056_v57 = vld [vmem:[%s3902_s1 + $0x430] sm:$0xff] }
  0x59   : > { %3082 = vmatprep.mubr.msk.f32.mxu0 %vm407_vm0, %v3292_v59  ;;  %v2793_v14 = vpack.c.bf16 %v1979_v11, %v1978_v10  ;;  %v2055_v55 = vld [vmem:[%s3902_s1 + $0x428] sm:$0xff] }
  0x5a   : > { %2764 = vmatpush3.bf16.msra.mxu1 %v2761_v2  ;;  %v1977_v2 = vld [vmem:[%s3902_s1 + $0x1b8] sm:$0xff] }
  0x5b   : > { %2892 = vmatpush3.bf16.msra.mxu0 %v2889_v5  ;;  %2766 = vmatprep.subr.bf16.mxu1 %v2765_v12  ;;  %v2040_v5 = vld [vmem:[%s3902_s1 + $0x3b0] sm:$0xff] }
  0x5c   : > { %2894 = vmatprep.subr.bf16.mxu0 %v2893_v13  ;;  %v2917_v9 = vpack.c.bf16 %v2041_v6, %v2040_v5 }
  0x5e   : > { %2768 = vmatpush3.bf16.msra.mxu1 %v2765_v12  ;;  %v2042_v12 = vld [vmem:[%s3902_s1 + $0x3c0] sm:$0xff] }
  0x5f   : > { %2896 = vmatpush3.bf16.msra.mxu0 %v2893_v13  ;;  %2770 = vmatprep.subr.bf16.mxu1 %v2769_v20  ;;  %v2043_v13 = vld [vmem:[%s3902_s1 + $0x3c8] sm:$0xff] }
  0x60   : > { %2898 = vmatprep.subr.bf16.mxu0 %v2897_v35  ;;  %v2921_v16 = vpack.c.bf16 %v2043_v13, %v2042_v12 }
  0x62   : > { %2772 = vmatpush3.bf16.msra.mxu1 %v2769_v20  ;;  %v2044_v20 = vld [vmem:[%s3902_s1 + $0x3d0] sm:$0xff] }
  0x63   : > { %2900 = vmatpush3.bf16.msra.mxu0 %v2897_v35  ;;  %2774 = vmatprep.subr.bf16.mxu1 %v2773_v26  ;;  %v2045_v35 = vld [vmem:[%s3902_s1 + $0x3d8] sm:$0xff] }
  0x64   : > { %2902 = vmatprep.subr.bf16.mxu0 %v2901_v27  ;;  %v2925_v22 = vpack.c.bf16 %v2045_v35, %v2044_v20 }
  0x66   : > { %2776 = vmatpush3.bf16.msra.mxu1 %v2773_v26  ;;  %v2047_v26 = vld [vmem:[%s3902_s1 + $0x3e8] sm:$0xff] }
  0x67   : > { %2904 = vmatpush3.bf16.msra.mxu0 %v2901_v27  ;;  %2778 = vmatprep.subr.bf16.mxu1 %v2777_v39  ;;  %v2801_v27 = vpack.c.bf16 %v1983_v25, %v1982_v23 }
  0x68   : > { %2906 = vmatprep.subr.bf16.mxu0 %v2905_v40 }
  0x69   : > { %2406 = vmatmul.mubr.f32.vlgmr.msra.gmra.mrb[0].mxu1 %v3507_v63  ;;  %v1976_v63 = vld [vmem:[%s3902_s1 + $0x1b0] sm:$0xff] }
  0x6a   : > { %2780 = vmatpush3.bf16.msra.mxu1 %v2777_v39  ;;  %3083 = vmatmul.mubr.msk.f32.vlgmr.msra.gmra.mrb[0].mxu0 %vm407_vm0, %v3349_v34  ;;  %v2789_v8 = vpack.c.bf16 %v1977_v2, %v1976_v63 }
  0x6b   : > { %2908 = vmatpush3.bf16.msra.mxu0 %v2905_v40  ;;  %2782 = vmatprep.subr.bf16.mxu1 %v2781_v49  ;;  %v2050_v40 = vld [vmem:[%s3902_s1 + $0x400] sm:$0xff] }
  0x6c   : > { %2910 = vmatprep.subr.bf16.mxu0 %v2909_v50  ;;  %2408 = vmatprep.mubr.f32.mxu1 %v3559_v29  ;;  %v2937_v33 = vpack.c.bf16 %v2051_v43, %v2050_v40 }
  0x6d   : > { %3084 = vmatprep.mubr.msk.f32.mxu0 %vm407_vm0, %v3358_v41  ;;  %2409 = vmatmul.mubr.f32.gmra.mrb[2].mxu1 %v3577_v42 }
  0x6e   : > { %2784 = vmatpush3.bf16.msra.mxu1 %v2781_v49  ;;  %3085 = vmatmul.mubr.msk.f32.gmra.mrb[2].mxu0 %vm407_vm0, %v3374_v54  ;;  %v2941_v49 = vpack.c.bf16 %v2053_v48, %v2052_v47 }
  0x6f   : > { %2912 = vmatpush3.bf16.msra.mxu0 %v2909_v50  ;;  %2786 = vmatprep.subr.bf16.mxu1 %v2785_v62  ;;  %v2054_v50 = vld [vmem:[%s3902_s1 + $0x420] sm:$0xff] }
  0x70   : > { %2914 = vmatprep.subr.bf16.mxu0 %v2913_v0  ;;  %2411 = vmatprep.mubr.f32.mxu1 %v3579_v44 }
  0x71   : > { %3086 = vmatprep.mubr.msk.f32.mxu0 %vm407_vm0, %v3395_v4  ;;  %2412 = vmatmul.mubr.f32.gmra.mrb[4].mxu1 %v3601_v51 }
  0x72   : > { %2788 = vmatpush3.bf16.msra.mxu1 %v2785_v62  ;;  %3087 = vmatmul.mubr.msk.f32.gmra.mrb[4].mxu0 %vm407_vm0, %v3417_v18 }
  0x73   : > { %2916 = vmatpush3.bf16.msra.mxu0 %v2913_v0  ;;  %2790 = vmatprep.subr.bf16.mxu1 %v2789_v8 }
  0x74   : > { %2918 = vmatprep.subr.bf16.mxu0 %v2917_v9  ;;  %2414 = vmatprep.mubr.f32.mxu1 %v3603_v56 }
  0x75   : > { %3088 = vmatprep.mubr.msk.f32.mxu0 %vm407_vm0, %v3436_v28  ;;  %2415 = vmatmul.mubr.f32.gmra.mrb[6].mxu1 %v3625_v1 }
  0x76   : > { %2792 = vmatpush3.bf16.msra.mxu1 %v2789_v8  ;;  %2591 = vmatmul.mubr.f32.gmra.mrb[6].mxu0 %v3121_v7  ;;  %v2046_v7 = vld [vmem:[%s3902_s1 + $0x3e0] sm:$0xff] }
  0x77   : > { %2920 = vmatpush3.bf16.msra.mxu0 %v2917_v9  ;;  %2794 = vmatprep.subr.bf16.mxu1 %v2793_v14  ;;  %v2929_v30 = vpack.c.bf16 %v2047_v26, %v2046_v7 }
  0x78   : > { %2922 = vmatprep.subr.bf16.mxu0 %v2921_v16  ;;  %3089 = vmatprep.mubr.msk.f32.mxu1 %vm407_vm0, %v3283_v53  ;;  %v1984_v53 = vld [vmem:[%s3902_s1 + $0x1f0] sm:$0xff] }
  0x79   : > { %2625 = vmatprep.mubr.f32.mxu0 %v3413_v15  ;;  %v2049_v15 = vld [vmem:[%s3902_s1 + $0x3f8] sm:$0xff]  ;;  %v2805_v32 = vpack.c.bf16 %v1985_v31, %v1984_v53 }
  0x7a   : > { %2796 = vmatpush3.bf16.msra.mxu1 %v2793_v14  ;;  %v2933_v39 = vpack.c.bf16 %v2049_v15, %v2048_v38 }
  0x7b   : > { %2924 = vmatpush3.bf16.msra.mxu0 %v2921_v16  ;;  %2798 = vmatprep.subr.bf16.mxu1 %v2797_v21 }
  0x7c   : > { %2926 = vmatprep.subr.bf16.mxu0 %v2925_v22 }
  0x7e   : > { %2800 = vmatpush3.bf16.msra.mxu1 %v2797_v21 }
  0x7f   : > { %2928 = vmatpush3.bf16.msra.mxu0 %v2925_v22  ;;  %2802 = vmatprep.subr.bf16.mxu1 %v2801_v27 }
  0x80   : > { %2930 = vmatprep.subr.bf16.mxu0 %v2929_v30 }
  0x82   : > { %2804 = vmatpush3.bf16.msra.mxu1 %v2801_v27 }
  0x83   : > { %2932 = vmatpush3.bf16.msra.mxu0 %v2929_v30  ;;  %2806 = vmatprep.subr.bf16.mxu1 %v2805_v32 }
  0x84   : > { %2934 = vmatprep.subr.bf16.mxu0 %v2933_v39 }
  0x86   : > { %2808 = vmatpush3.bf16.msra.mxu1 %v2805_v32 }
  0x87   : > { %2936 = vmatpush3.bf16.msra.mxu0 %v2933_v39  ;;  %2969 = vmatprep.subr.bf16.mxu1 %v2937_v33 }
  0x88   : > { %2938 = vmatprep.subr.bf16.mxu0 %v2937_v33 }
  0x89   : > { %3090 = vmatmul.mubr.msk.f32.vlgmr.msra.gmra.mrb[0].mxu1 %vm407_vm0, %v3292_v59  ;;  %v2945_v59 = vpack.c.bf16 %v2055_v55, %v2054_v50 }
  0x8a   : > { %2626 = vmatmul.mubr.f32.vlgmr.msra.gmra.mrb[0].mxu0 %v3440_v36  ;;  %2977 = vmatpush3.bf16.msra.mxu1 %v2937_v33  ;;  %v2057_v36 = vld [vmem:[%s3902_s1 + $0x438] sm:$0xff] }
  0x8b   : > { %2940 = vmatpush3.bf16.msra.mxu0 %v2937_v33  ;;  %3091 = vmatprep.mubr.msk.f32.mxu1 %vm407_vm0, %v3349_v34  ;;  %v2949_v34 = vpack.c.bf16 %v2057_v36, %v2056_v57 }
  0x8c   : > { %2628 = vmatprep.mubr.f32.mxu0 %v3444_v37  ;;  %2942 = vmatprep.subr.bf16.mxu0 %v2941_v49  ;;  %v2059_v37 = vld [vmem:[%s3902_s1 + $0x448] sm:$0xff] }
  0x8d   : > { %3092 = vmatmul.mubr.msk.f32.gmra.mrb[2].mxu1 %vm407_vm0, %v3358_v41  ;;  %2970 = vmatprep.subr.bf16.mxu1 %v2941_v49  ;;  %v2058_v41 = vld [vmem:[%s3902_s1 + $0x440] sm:$0xff] }
  0x8e   : > { %2629 = vmatmul.mubr.f32.gmra.mrb[2].mxu0 %v3467_v45  ;;  %2978 = vmatpush3.bf16.msra.mxu1 %v2941_v49  ;;  %v2953_v45 = vpack.c.bf16 %v2059_v37, %v2058_v41 }
  0x8f   : > { %2944 = vmatpush3.bf16.msra.mxu0 %v2941_v49  ;;  %3093 = vmatprep.mubr.msk.f32.mxu1 %vm407_vm0, %v3374_v54  ;;  %v1489_v54 = vld [vmem:[#allocation2 + $0x91] sm:$0xff] }
  0x90   : > { %2631 = vmatprep.mubr.f32.mxu0 %v3469_v46  ;;  %2946 = vmatprep.subr.bf16.mxu0 %v2945_v59  ;;  %v2060_v46 = vld [vmem:[%s3902_s1 + $0x450] sm:$0xff] }
  0x91   : > { %3094 = vmatmul.mubr.msk.f32.gmra.mrb[4].mxu1 %vm407_vm0, %v3395_v4  ;;  %2971 = vmatprep.subr.bf16.mxu1 %v2945_v59  ;;  %v2061_v4 = vld [vmem:[%s3902_s1 + $0x458] sm:$0xff] }
  0x92   : > { %2632 = vmatmul.mubr.f32.gmra.mrb[4].mxu0 %v3487_v52  ;;  %2979 = vmatpush3.bf16.msra.mxu1 %v2945_v59  ;;  %v2062_v52 = vld [vmem:[%s3902_s1 + $0x460] sm:$0xff] }
  0x93   : > { %2948 = vmatpush3.bf16.msra.mxu0 %v2945_v59  ;;  %3095 = vmatprep.mubr.msk.f32.mxu1 %vm407_vm0, %v3417_v18  ;;  %v2957_v18 = vpack.c.bf16 %v2061_v4, %v2060_v46 }
  0x94   : > { %2634 = vmatprep.mubr.f32.mxu0 %v3496_v60  ;;  %2950 = vmatprep.subr.bf16.mxu0 %v2949_v34  ;;  %v2063_v60 = vld [vmem:[%s3902_s1 + $0x468] sm:$0xff] }
  0x95   : > { %3096 = vmatmul.mubr.msk.f32.gmra.mrb[6].mxu1 %vm407_vm0, %v3436_v28  ;;  %2972 = vmatprep.subr.bf16.mxu1 %v2949_v34  ;;  %v2961_v24 = vpack.c.bf16 %v2063_v60, %v2062_v52  ;;  %v2064_v28 = vld [vmem:[%s3902_s1 + $0x470] sm:$0xff] }
  0x96   : > { %2635 = vmatmul.mubr.f32.gmra.mrb[6].mxu0 %v1489_v54  ;;  %2980 = vmatpush3.bf16.msra.mxu1 %v2949_v34  ;;  %v2965_v61 = vpack.c.bf16 %v2065_v58, %v2064_v28 }
  0x97   : > { %2952 = vmatpush3.bf16.msra.mxu0 %v2949_v34  ;;  %2973 = vmatprep.subr.bf16.mxu1 %v2953_v45 }
  0x98   : > { %2954 = vmatprep.subr.bf16.mxu0 %v2953_v45  ;;  %2669 = vmatprep.mubr.f32.mxu0 %v3559_v29  ;;  %v1627_v29 = vld [vmem:[#allocation2 + $0x92] sm:$0xff] }
  0x99   : > { %2675 = vmatprep.mubr.f32.mxu1 %v3603_v56 }
  0x9a   : > { %2981 = vmatpush3.bf16.msra.mxu1 %v2953_v45 }
  0x9b   : > { %2956 = vmatpush3.bf16.msra.mxu0 %v2953_v45  ;;  %2974 = vmatprep.subr.bf16.mxu1 %v2957_v18 }
  0x9c   : > { %2958 = vmatprep.subr.bf16.mxu0 %v2957_v18 }
  0x9e   : > { %2982 = vmatpush3.bf16.msra.mxu1 %v2957_v18 }
  0x9f   : > { %2960 = vmatpush3.bf16.msra.mxu0 %v2957_v18  ;;  %2975 = vmatprep.subr.bf16.mxu1 %v2961_v24 }
  0xa0   : > { %2962 = vmatprep.subr.bf16.mxu0 %v2961_v24 }
  0xa2   : > { %2983 = vmatpush3.bf16.msra.mxu1 %v2961_v24 }
  0xa3   : > { %2964 = vmatpush3.bf16.msra.mxu0 %v2961_v24  ;;  %2976 = vmatprep.subr.bf16.mxu1 %v2965_v61 }
  0xa4   : > { %2966 = vmatprep.subr.bf16.mxu0 %v2965_v61 }
  0xa6   : > { %2984 = vmatpush3.bf16.msra.mxu1 %v2965_v61 }
  0xa7   : > { %2968 = vmatpush3.bf16.msra.mxu0 %v2965_v61 }
  0xa9   : > { %2676 = vmatmul.mubr.f32.vlgmr.msra.gmra.mrb[8].mxu1 %v3625_v1 }
  0xaa   : > { %2670 = vmatmul.mubr.f32.vlgmr.msra.gmra.mrb[0].mxu0 %v3577_v42  ;;  %2678 = vmatprep.mubr.f32.mxu1 %v3627_v3 }
  0xab   : > { %2672 = vmatprep.mubr.f32.mxu0 %v3579_v44 }
  0xad   : > { %2679 = vmatmul.mubr.f32.gmra.mrb[10].mxu1 %v1627_v29 }
  0xae   : > { %2673 = vmatmul.mubr.f32.gmra.mrb[2].mxu0 %v3601_v51 }
 0x15c   : > { %v2451_v56 = vpop.f32.mrb[0].mxu1 }
 0x15d   : > { %v1020_v62 = vpop.f32.mrb[1].mxu1 }
 0x160   : > { %v2454_v0 = vpop.f32.mrb[2].mxu1 }
 0x161   : > { %v1030_v63 = vpop.f32.mrb[3].mxu1 }
 0x164   : > { %v2457_v2 = vpop.f32.mrb[4].mxu1 }
 0x165   : > { %v2633_v5 = vpop.f32.mrb[4].mxu0  ;;  %v1040_v6 = vpop.f32.mrb[5].mxu1 }
 0x166   : > { %v2989_v8 = vadd.f32 %v2633_v5, %v2457_v2  ;;  %v1593_v1 = vpop.f32.mrb[5].mxu0 }
 0x167   : > { %v2991_v9 = vadd.f32 %v1593_v1, %v1040_v6 }
 0x168   : > { %v2460_v42 = vpop.f32.mrb[6].mxu1 }
 0x169   : > { %v2636_v10 = vpop.f32.mrb[6].mxu0  ;;  %v1050_v3 = vpop.f32.mrb[7].mxu1 }
 0x16a   : > { %v2993_v11 = vadd.f32 %v2636_v10, %v2460_v42  ;;  %v1603_v12 = vpop.f32.mrb[7].mxu0 }
 0x16b   : > { %v2995_v44 = vadd.f32 %v1603_v12, %v1050_v3 }
 0x17c   : > { %v2677_v51 = vpop.f32.mrb[8].mxu1 }
 0x17d   : > { %v2671_v13 = vpop.f32.mrb[0].mxu0  ;;  %v2990_v14 = vadd.f32 %v2989_v8, %v2677_v51  ;;  %v1731_v16 = vpop.f32.mrb[9].mxu1 }
 0x17e   : > { %v2985_v17 = vadd.f32 %v2671_v13, %v2451_v56  ;;  %v1711_v19 = vpop.f32.mrb[1].mxu0  ;;  %v2992_v20 = vadd.f32 %v2991_v9, %v1731_v16 }
 0x17f   : > { %1763 = vst [vmem:[%s258_s28 + $0x28] sm:$0xff] %v2990_v14  ;;  %v2986_v35 = vadd.f32 %v1711_v19, %v1020_v62  ;;  %v1784_v50 = vmul.f32 %v2990_v14, %v2990_v14 }
 0x180   : > { %1759 = vst [vmem:[%s258_s28 + $0x8] sm:$0xff] %v2985_v17  ;;  %v1780_v21 = vmul.f32 %v2985_v17, %v2985_v17  ;;  %1762 = vst [vmem:[%s258_s28 + $0x20] sm:$0xff] %v2992_v20  ;;  %v2680_v22 = vpop.f32.mrb[10].mxu1  ;;  %v1783_v47 = vmul.f32 %v2992_v20, %v2992_v20 }
 0x181   : > { %1758 = vst [vmem:[%s258_s28] sm:$0xff] %v2986_v35  ;;  %v1766_v23 = vadd.f32 %v2986_v35, %v2985_v17  ;;  %v1779_v25 = vmul.f32 %v2986_v35, %v2986_v35  ;;  %v2674_v7 = vpop.f32.mrb[2].mxu0  ;;  %v2994_v26 = vadd.f32 %v2993_v11, %v2680_v22  ;;  %v1741_v27 = vpop.f32.mrb[11].mxu1 }
 0x182   : > { %v2987_v30 = vadd.f32 %v2674_v7, %v2454_v0  ;;  %v1721_v53 = vpop.f32.mrb[3].mxu0  ;;  %v2996_v31 = vadd.f32 %v2995_v44, %v1741_v27 }
 0x183   : > { %v1787_v38 = vadd.f32 %v1780_v21, %v1779_v25  ;;  %1765 = vst [vmem:[%s258_s28 + $0x38] sm:$0xff] %v2994_v26  ;;  %v2988_v15 = vadd.f32 %v1721_v53, %v1030_v63  ;;  %v1786_v41 = vmul.f32 %v2994_v26, %v2994_v26 }
 0x184   : > { %1761 = vst [vmem:[%s258_s28 + $0x18] sm:$0xff] %v2987_v30  ;;  %1764 = vst [vmem:[%s258_s28 + $0x30] sm:$0xff] %v2996_v31  ;;  %v1782_v40 = vmul.f32 %v2987_v30, %v2987_v30  ;;  %v1785_v36 = vmul.f32 %v2996_v31, %v2996_v31 }
 0x185   : > { %1760 = vst [vmem:[%s258_s28 + $0x10] sm:$0xff] %v2988_v15  ;;  %v1767_v32 = vadd.f32 %v2988_v15, %v1766_v23  ;;  %v1781_v39 = vmul.f32 %v2988_v15, %v2988_v15 }
 0x187   : > { %v1768_v43 = vadd.f32 %v2987_v30, %v1767_v32  ;;  %v1788_v33 = vadd.f32 %v1787_v38, %v1781_v39 }
 0x189   : > { %v1789_v48 = vadd.f32 %v1788_v33, %v1782_v40  ;;  %v1769_v49 = vadd.f32 %v2992_v20, %v1768_v43 }
 0x18b   : > { %v1770_v55 = vadd.f32 %v2990_v14, %v1769_v49  ;;  %v1790_v59 = vadd.f32 %v1789_v48, %v1783_v47 }
 0x18d   : > { %v1771_v57 = vadd.f32 %v2996_v31, %v1770_v55  ;;  %v1791_v34 = vadd.f32 %v1790_v59, %v1784_v50 }
 0x18f   : > { %v1772_v37 = vadd.f32 %v2994_v26, %v1771_v57  ;;  %v1792_v54 = vadd.f32 %v1791_v34, %v1785_v36 }
 0x191   : > { %v1773_v45 = vrot.slane %v1772_v37, 4  ;;  %v1793_v46 = vadd.f32 %v1792_v54, %v1786_v41 }
 0x193   : > { %v1774_v4 = vadd.f32 %v1773_v45, %v1772_v37  ;;  %v1794_v18 = vrot.slane %v1793_v46, 4 }
 0x195   : > { %v1775_v52 = vrot.slane %v1774_v4, 2  ;;  %v1795_v60 = vadd.f32 %v1794_v18, %v1793_v46 }
 0x197   : > { %v1776_v24 = vadd.f32 %v1775_v52, %v1774_v4  ;;  %v1796_v28 = vrot.slane %v1795_v60, 2 }
 0x199   : > { %v1777_v58 = vrot.slane %v1776_v24, 1  ;;  %v1797_v61 = vadd.f32 %v1796_v28, %v1795_v60 }
 0x19b   : > { %v1798_v29 = vrot.slane %v1797_v61, 1  ;;  %v1778_v56 = vadd.f32 %v1777_v58, %v1776_v24 }
 0x19d   : > { %v1799_v62 = vadd.f32 %v1798_v29, %v1797_v61 }
 0x19f   : > { %v1801_v0 = vsel %vm1800_vm2, %v1778_v56, %v1799_v62 }
 0x1a0   : > { %1802 = vst [vmem:[%s266_s7] sm:$0x3] %v1801_v0 }
 0x1a1 PF: > { %s16_s20 = sadd.s32 1, %s3119_s20   ;;  %s3907_s18 = smov %s3115_s19 }
 0x1a2   : > { %p13_p5 = scmp.ge.s32.totalorder %s16_s20, 4   ;;  %s3908_s19 = smov %s3910_s21 }
 0x1a4   :  { %15 = sbr.rel (!%p13_p5) target bundleno = 2 (0x2), region = 89 }

</bundles_post_ra>
